<compile_context>
chip_gen: v7x
topology: tpu7x:2x2x1
jax: 0.10.0
libtpu: 0.0.40
codegen_flags: <defaults>
</compile_context>

<pallas_src>
import math

import jax
import jax.numpy as jnp
from jax.experimental import pallas as pl
from jax.experimental.pallas import tpu as pltpu

KERSIZE = (3, 5, 10)             # kernel sizes of the small / middle / large branches
LANE = 128                       # TPU lane width
_MAX_TB = 8                      # cap on batch elements unrolled per grid step
_VMEM_BUDGET = 8 * 1024 * 1024   # soft budget for the double-buffered x/out blocks


# --------------------------------------------------------------------------- #
# Kernel                                                                      #
# --------------------------------------------------------------------------- #
def _branch2d(x, dw, cb, T, k, woff, boff):
    """Two depthwise (groups=C) VALID conv1d + ReLU, then global average pool.

    x  : (C, Tp) f32 slab (time zero-padded to a lane multiple; only [:T] is real)
    dw : (C, 36) packed depthwise weights; this branch's taps live at columns
         [woff, woff + 2k)
    cb : (C, 8) packed per-channel biases; this branch at columns boff, boff + 1
    returns (C, 1) f32 pooled feature
    """
    L1 = T - k + 1
    acc = dw[:, woff:woff + 1] * x[:, 0:L1]
    for j in range(1, k):                              # static unrolled taps
        acc = acc + dw[:, woff + j:woff + j + 1] * x[:, j:j + L1]
    h1 = jnp.maximum(acc + cb[:, boff:boff + 1], 0.0)

    L2 = L1 - k + 1
    o2 = woff + k
    acc = dw[:, o2:o2 + 1] * h1[:, 0:L2]
    for j in range(1, k):
        acc = acc + dw[:, o2 + j:o2 + j + 1] * h1[:, j:j + L2]
    h2 = jnp.maximum(acc + cb[:, boff + 1:boff + 2], 0.0)

    return jnp.mean(h2, axis=1, keepdims=True)         # AdaptiveAvgPool1d(1) -> (C, 1)


def _make_kernel(tb, C, Cr, T):
    # column offsets of each branch's first depthwise kernel inside the dw slab
    woffs = (0, 2 * KERSIZE[0], 2 * (KERSIZE[0] + KERSIZE[1]))   # (0, 6, 16)

    def kernel(x_ref, dw_ref, cb_ref, w1_ref, w2_ref, misc_ref, out_ref):
        dw = dw_ref[...]                       # (C, 36) depthwise weights
        cb = cb_ref[...]                       # (C, 8)  per-channel biases (+ fc biases)
        w1 = w1_ref[...]                       # (Cr, C) fc1 weight
        w2 = w2_ref[...]                       # (C, Cr) fc2 weight
        misc = misc_ref[...]                   # (1, 4) = [wc0, wc1, wc2, bc]
        b1c = cb[0:Cr, 6:7]                    # (Cr, 1) fc1 bias
        b2c = cb[:, 7:8]                       # (C, 1)  fc2 bias

        for b in range(tb):                    # static unroll over the batch tile
            x = x_ref[b].astype(jnp.float32)   # (C, Tp)

            f_s = _branch2d(x, dw, cb, T, KERSIZE[0], woffs[0], 0)
            f_m = _branch2d(x, dw, cb, T, KERSIZE[1], woffs[1], 2)
            f_l = _branch2d(x, dw, cb, T, KERSIZE[2], woffs[2], 4)

            # feature_concate_fc: Linear(3, 1) over the concatenated features
            squeeze = (f_s * misc[:, 0:1] + f_m * misc[:, 1:2]
                       + f_l * misc[:, 2:3] + misc[:, 3:4])          # (C, 1)

            # fc1 -> ReLU -> fc2 -> sigmoid
            h = jnp.maximum(
                jnp.dot(w1, squeeze, preferred_element_type=jnp.float32) + b1c,
                0.0)                                                 # (Cr, 1)
            logit = jnp.dot(w2, h, preferred_element_type=jnp.float32) + b2c
            scale = 1.0 / (1.0 + jnp.exp(-logit))                    # (C, 1)

            out_ref[b] = (x * scale).astype(out_ref.dtype)

    return kernel


# --------------------------------------------------------------------------- #
# Host-side wrapper                                                           #
# --------------------------------------------------------------------------- #
def _pack_params(p, C, Cr):
    """Pack the 18 module parameters into 5 lane-friendly buffers."""
    dw = jnp.concatenate([p["ws1"], p["ws2"], p["wm1"], p["wm2"],
                          p["wl1"], p["wl2"]], axis=1).astype(jnp.float32)   # (C, 36)
    b1_pad = jnp.pad(p["b1"], ((0, C - Cr), (0, 0)))
    cb = jnp.concatenate([p["bs1"], p["bs2"], p["bm1"], p["bm2"],
                          p["bl1"], p["bl2"], b1_pad, p["b2"]],
                         axis=1).astype(jnp.float32)                          # (C, 8)
    misc = jnp.concatenate([p["wc"], p["bc"]], axis=1).astype(jnp.float32)    # (1, 4)
    return dw, cb, p["w1"].astype(jnp.float32), p["w2"].astype(jnp.float32), misc


def channel_deep_time_sense_se(x, params):
    B, C, T = x.shape
    k_max = max(KERSIZE)
    if T < 2 * (k_max - 1) + 1:
        raise ValueError(
            f"T={T} too short: the largest branch (kernel={k_max}) needs "
            f"T >= {2 * (k_max - 1) + 1}")
    Cr = params["w1"].shape[0]

    # Lane-dense time axis: pad to a multiple of 128 (no-op when already aligned).
    Tp = ((T + LANE - 1) // LANE) * LANE
    xp = x if Tp == T else jnp.pad(x, ((0, 0), (0, 0), (0, Tp - T)))

    # Batch tile: largest divisor of B that fits the VMEM budget / unroll cap.
    bytes_per_b = C * Tp * 4 * 6            # ~ in+out double-buffered + live temps
    tb = max(1, min(B, _MAX_TB, _VMEM_BUDGET // max(bytes_per_b, 1)))
    while B % tb:
        tb -= 1

    dw, cb, w1, w2, misc = _pack_params(params, C, Cr)
    kernel = _make_kernel(tb, C, Cr, T)

    packed = [dw, cb, w1, w2, misc]
    # Full-array blocks with a constant index map: DMA'd once, re-used every step.
    const_specs = [pl.BlockSpec(a.shape, lambda i: (0, 0)) for a in packed]

    out = pl.pallas_call(
        kernel,
        out_shape=jax.ShapeDtypeStruct((B, C, Tp), x.dtype),
        grid=(B // tb,),
        in_specs=[pl.BlockSpec((tb, C, Tp), lambda i: (i, 0, 0))] + const_specs,
        out_specs=pl.BlockSpec((tb, C, Tp), lambda i: (i, 0, 0)),
        compiler_params=pltpu.CompilerParams(
            dimension_semantics=("parallel",),
            vmem_limit_bytes=32 * 1024 * 1024),
    )(xp, *packed)

    return out if Tp == T else out[:, :, :T]


# --------------------------------------------------------------------------- #
# Deterministic synthetic parameters + pure-JAX reference                     #
# --------------------------------------------------------------------------- #
def init_params(key, num_channels, reduction_ratio=2):
    """Synthetic params matching the PyTorch module's shapes."""
    C = num_channels
    Cr = C // reduction_ratio
    keys = jax.random.split(key, 18)

    def u(k, shape, fan_in):
        bound = 1.0 / math.sqrt(fan_in)
        return jax.random.uniform(k, shape, jnp.float32, -bound, bound)

    p = {}
    i = 0
    for name, ks in zip(("s", "m", "l"), KERSIZE):
        for layer in (1, 2):
            p[f"w{name}{layer}"] = u(keys[i], (C, ks), ks); i += 1   # depthwise weight
            p[f"b{name}{layer}"] = u(keys[i], (C, 1), ks); i += 1    # conv bias
    p["wc"] = u(keys[i], (1, 3), 3); i += 1                          # Linear(3, 1) weight
    p["bc"] = u(keys[i], (1, 1), 3); i += 1                          # Linear(3, 1) bias
    p["w1"] = u(keys[i], (Cr, C), C); i += 1                         # fc1 weight
    p["b1"] = u(keys[i], (Cr, 1), C); i += 1                         # fc1 bias
    p["w2"] = u(keys[i], (C, Cr), Cr); i += 1                        # fc2 weight
    p["b2"] = u(keys[i], (C, 1), Cr); i += 1                         # fc2 bias
    return p


def reference(x, p):
    """Pure-JAX reference reproducing the PyTorch forward exactly."""
    def dconv(y, w, b):
        out = jax.lax.conv_general_dilated(
            y, w[:, None, :], (1,), "VALID",
            dimension_numbers=("NCH", "OIH", "NCH"),
            feature_group_count=y.shape[1])
        return out + b[None, :, :]

    def branch(w1, b1, w2, b2):
        h1 = jax.nn.relu(dconv(x, w1, b1))
        h2 = jax.nn.relu(dconv(h1, w2, b2))
        return jnp.mean(h2, axis=2, keepdims=True)                  # (B, C, 1)

    fs = branch(p["ws1"], p["bs1"], p["ws2"], p["bs2"])
    fm = branch(p["wm1"], p["bm1"], p["wm2"], p["bm2"])
    fl = branch(p["wl1"], p["bl1"], p["wl2"], p["bl2"])
    feat = jnp.concatenate([fs, fm, fl], axis=2)                    # (B, C, 3)
    squeeze = jnp.einsum("bcf,f->bc", feat, p["wc"][0]) + p["bc"][0, 0]
    h = jax.nn.relu(squeeze @ p["w1"].T + p["b1"][:, 0])
    scale = jax.nn.sigmoid(h @ p["w2"].T + p["b2"][:, 0])
    return x * scale[:, :, None]


if __name__ == "__main__":
    B, C, T = 2, 8, 32          # T must exceed 2*(10-1) for the large branch
    key = jax.random.PRNGKey(0)
    kx, kp = jax.random.split(key)
    x = jax.random.normal(kx, (B, C, T), dtype=jnp.float32)
    params = init_params(kp, C, reduction_ratio=2)

    out = jax.jit(channel_deep_time_sense_se)(x, params)
    out = jax.block_until_ready(out)

    ref = jax.block_until_ready(reference(x, params))
    assert out.shape == (B, C, T)
    assert jnp.allclose(out, ref, rtol=1e-4, atol=1e-5), (
        f"max abs err {float(jnp.max(jnp.abs(out - ref)))}")

    print("KERNEL_OK")
</pallas_src>

<mosaic_0001>
module attributes {stable_mosaic.version = 11 : i64} {
  func.func @kernel(%arg0: i32, %arg1: memref<2x8x128xf32, #tpu.memory_space<vmem>>, %arg2: memref<8x36xf32, #tpu.memory_space<vmem>>, %arg3: memref<8x8xf32, #tpu.memory_space<vmem>>, %arg4: memref<4x8xf32, #tpu.memory_space<vmem>>, %arg5: memref<8x4xf32, #tpu.memory_space<vmem>>, %arg6: memref<1x4xf32, #tpu.memory_space<vmem>>, %arg7: memref<2x8x128xf32, #tpu.memory_space<vmem>>) attributes {dimension_semantics = [#tpu.dimension_semantics<parallel>], iteration_bounds = array<i64: 1>, scalar_prefetch = 0 : i64, scratch_operands = 0 : i64, tpu.core_type = #tpu.core_type<tc>, window_params = [{transform_indices = @transform_0, window_bounds = array<i64: 2, 8, 128>}, {pipeline_mode = #tpu.pipeline_mode<synchronous>, transform_indices = @transform_1, window_bounds = array<i64: 8, 36>}, {pipeline_mode = #tpu.pipeline_mode<synchronous>, transform_indices = @transform_2, window_bounds = array<i64: 8, 8>}, {pipeline_mode = #tpu.pipeline_mode<synchronous>, transform_indices = @transform_3, window_bounds = array<i64: 4, 8>}, {pipeline_mode = #tpu.pipeline_mode<synchronous>, transform_indices = @transform_4, window_bounds = array<i64: 8, 4>}, {pipeline_mode = #tpu.pipeline_mode<synchronous>, transform_indices = @transform_5, window_bounds = array<i64: 1, 4>}, {transform_indices = @transform_6, window_bounds = array<i64: 2, 8, 128>}]} {
    %c0 = arith.constant 0 : index
    %c0_0 = arith.constant 0 : index
    %0 = vector.load %arg2[%c0, %c0_0] : memref<8x36xf32, #tpu.memory_space<vmem>>, vector<8x36xf32>
    %c0_1 = arith.constant 0 : index
    %c0_2 = arith.constant 0 : index
    %1 = vector.load %arg3[%c0_1, %c0_2] : memref<8x8xf32, #tpu.memory_space<vmem>>, vector<8x8xf32>
    %c0_3 = arith.constant 0 : index
    %c0_4 = arith.constant 0 : index
    %2 = vector.load %arg4[%c0_3, %c0_4] : memref<4x8xf32, #tpu.memory_space<vmem>>, vector<4x8xf32>
    %c0_5 = arith.constant 0 : index
    %c0_6 = arith.constant 0 : index
    %3 = vector.load %arg5[%c0_5, %c0_6] : memref<8x4xf32, #tpu.memory_space<vmem>>, vector<8x4xf32>
    %c0_7 = arith.constant 0 : index
    %c0_8 = arith.constant 0 : index
    %4 = vector.load %arg6[%c0_7, %c0_8] : memref<1x4xf32, #tpu.memory_space<vmem>>, vector<1x4xf32>
    %5 = vector.extract_strided_slice %1 {offsets = [0, 6], sizes = [4, 1], strides = [1, 1]} : vector<8x8xf32> to vector<4x1xf32>
    %6 = vector.extract_strided_slice %1 {offsets = [0, 7], sizes = [8, 1], strides = [1, 1]} : vector<8x8xf32> to vector<8x1xf32>
    %c0_9 = arith.constant 0 : index
    %c0_10 = arith.constant 0 : index
    %c0_11 = arith.constant 0 : index
    %7 = vector.load %arg1[%c0_9, %c0_10, %c0_11] : memref<2x8x128xf32, #tpu.memory_space<vmem>>, vector<1x8x128xf32>
    %8 = vector.shape_cast %7 : vector<1x8x128xf32> to vector<8x128xf32>
    %9 = vector.extract_strided_slice %0 {offsets = [0, 0], sizes = [8, 1], strides = [1, 1]} : vector<8x36xf32> to vector<8x1xf32>
    %10 = vector.extract_strided_slice %8 {offsets = [0, 0], sizes = [8, 30], strides = [1, 1]} : vector<8x128xf32> to vector<8x30xf32>
    %11 = vector.broadcast %9 : vector<8x1xf32> to vector<8x30xf32>
    %12 = arith.mulf %11, %10 : vector<8x30xf32>
    %13 = vector.extract_strided_slice %0 {offsets = [0, 1], sizes = [8, 1], strides = [1, 1]} : vector<8x36xf32> to vector<8x1xf32>
    %14 = vector.extract_strided_slice %8 {offsets = [0, 1], sizes = [8, 30], strides = [1, 1]} : vector<8x128xf32> to vector<8x30xf32>
    %15 = vector.broadcast %13 : vector<8x1xf32> to vector<8x30xf32>
    %16 = arith.mulf %15, %14 : vector<8x30xf32>
    %17 = arith.addf %12, %16 : vector<8x30xf32>
    %18 = vector.extract_strided_slice %0 {offsets = [0, 2], sizes = [8, 1], strides = [1, 1]} : vector<8x36xf32> to vector<8x1xf32>
    %19 = vector.extract_strided_slice %8 {offsets = [0, 2], sizes = [8, 30], strides = [1, 1]} : vector<8x128xf32> to vector<8x30xf32>
    %20 = vector.broadcast %18 : vector<8x1xf32> to vector<8x30xf32>
    %21 = arith.mulf %20, %19 : vector<8x30xf32>
    %22 = arith.addf %17, %21 : vector<8x30xf32>
    %23 = vector.extract_strided_slice %1 {offsets = [0, 0], sizes = [8, 1], strides = [1, 1]} : vector<8x8xf32> to vector<8x1xf32>
    %24 = vector.broadcast %23 : vector<8x1xf32> to vector<8x30xf32>
    %25 = arith.addf %22, %24 : vector<8x30xf32>
    %cst = arith.constant 0.000000e+00 : f32
    %26 = vector.broadcast %cst : f32 to vector<8x30xf32>
    %27 = arith.maximumf %25, %26 : vector<8x30xf32>
    %28 = vector.extract_strided_slice %0 {offsets = [0, 3], sizes = [8, 1], strides = [1, 1]} : vector<8x36xf32> to vector<8x1xf32>
    %29 = vector.extract_strided_slice %27 {offsets = [0, 0], sizes = [8, 28], strides = [1, 1]} : vector<8x30xf32> to vector<8x28xf32>
    %30 = vector.broadcast %28 : vector<8x1xf32> to vector<8x28xf32>
    %31 = arith.mulf %30, %29 : vector<8x28xf32>
    %32 = vector.extract_strided_slice %0 {offsets = [0, 4], sizes = [8, 1], strides = [1, 1]} : vector<8x36xf32> to vector<8x1xf32>
    %33 = vector.extract_strided_slice %27 {offsets = [0, 1], sizes = [8, 28], strides = [1, 1]} : vector<8x30xf32> to vector<8x28xf32>
    %34 = vector.broadcast %32 : vector<8x1xf32> to vector<8x28xf32>
    %35 = arith.mulf %34, %33 : vector<8x28xf32>
    %36 = arith.addf %31, %35 : vector<8x28xf32>
    %37 = vector.extract_strided_slice %0 {offsets = [0, 5], sizes = [8, 1], strides = [1, 1]} : vector<8x36xf32> to vector<8x1xf32>
    %38 = vector.extract_strided_slice %27 {offsets = [0, 2], sizes = [8, 28], strides = [1, 1]} : vector<8x30xf32> to vector<8x28xf32>
    %39 = vector.broadcast %37 : vector<8x1xf32> to vector<8x28xf32>
    %40 = arith.mulf %39, %38 : vector<8x28xf32>
    %41 = arith.addf %36, %40 : vector<8x28xf32>
    %42 = vector.extract_strided_slice %1 {offsets = [0, 1], sizes = [8, 1], strides = [1, 1]} : vector<8x8xf32> to vector<8x1xf32>
    %43 = vector.broadcast %42 : vector<8x1xf32> to vector<8x28xf32>
    %44 = arith.addf %41, %43 : vector<8x28xf32>
    %cst_12 = arith.constant 0.000000e+00 : f32
    %45 = vector.broadcast %cst_12 : f32 to vector<8x28xf32>
    %46 = arith.maximumf %44, %45 : vector<8x28xf32>
    %cst_13 = arith.constant dense<0.000000e+00> : vector<8xf32>
    %47 = vector.multi_reduction <add>, %46, %cst_13 [1] : vector<8x28xf32> to vector<8xf32>
    %48 = vector.shape_cast %47 : vector<8xf32> to vector<8x1xf32>
    %cst_14 = arith.constant 2.800000e+01 : f32
    %49 = vector.broadcast %cst_14 : f32 to vector<8x1xf32>
    %50 = arith.divf %48, %49 : vector<8x1xf32>
    %51 = vector.extract_strided_slice %0 {offsets = [0, 6], sizes = [8, 1], strides = [1, 1]} : vector<8x36xf32> to vector<8x1xf32>
    %52 = vector.extract_strided_slice %8 {offsets = [0, 0], sizes = [8, 28], strides = [1, 1]} : vector<8x128xf32> to vector<8x28xf32>
    %53 = vector.broadcast %51 : vector<8x1xf32> to vector<8x28xf32>
    %54 = arith.mulf %53, %52 : vector<8x28xf32>
    %55 = vector.extract_strided_slice %0 {offsets = [0, 7], sizes = [8, 1], strides = [1, 1]} : vector<8x36xf32> to vector<8x1xf32>
    %56 = vector.extract_strided_slice %8 {offsets = [0, 1], sizes = [8, 28], strides = [1, 1]} : vector<8x128xf32> to vector<8x28xf32>
    %57 = vector.broadcast %55 : vector<8x1xf32> to vector<8x28xf32>
    %58 = arith.mulf %57, %56 : vector<8x28xf32>
    %59 = arith.addf %54, %58 : vector<8x28xf32>
    %60 = vector.extract_strided_slice %0 {offsets = [0, 8], sizes = [8, 1], strides = [1, 1]} : vector<8x36xf32> to vector<8x1xf32>
    %61 = vector.extract_strided_slice %8 {offsets = [0, 2], sizes = [8, 28], strides = [1, 1]} : vector<8x128xf32> to vector<8x28xf32>
    %62 = vector.broadcast %60 : vector<8x1xf32> to vector<8x28xf32>
    %63 = arith.mulf %62, %61 : vector<8x28xf32>
    %64 = arith.addf %59, %63 : vector<8x28xf32>
    %65 = vector.extract_strided_slice %0 {offsets = [0, 9], sizes = [8, 1], strides = [1, 1]} : vector<8x36xf32> to vector<8x1xf32>
    %66 = vector.extract_strided_slice %8 {offsets = [0, 3], sizes = [8, 28], strides = [1, 1]} : vector<8x128xf32> to vector<8x28xf32>
    %67 = vector.broadcast %65 : vector<8x1xf32> to vector<8x28xf32>
    %68 = arith.mulf %67, %66 : vector<8x28xf32>
    %69 = arith.addf %64, %68 : vector<8x28xf32>
    %70 = vector.extract_strided_slice %0 {offsets = [0, 10], sizes = [8, 1], strides = [1, 1]} : vector<8x36xf32> to vector<8x1xf32>
    %71 = vector.extract_strided_slice %8 {offsets = [0, 4], sizes = [8, 28], strides = [1, 1]} : vector<8x128xf32> to vector<8x28xf32>
    %72 = vector.broadcast %70 : vector<8x1xf32> to vector<8x28xf32>
    %73 = arith.mulf %72, %71 : vector<8x28xf32>
    %74 = arith.addf %69, %73 : vector<8x28xf32>
    %75 = vector.extract_strided_slice %1 {offsets = [0, 2], sizes = [8, 1], strides = [1, 1]} : vector<8x8xf32> to vector<8x1xf32>
    %76 = vector.broadcast %75 : vector<8x1xf32> to vector<8x28xf32>
    %77 = arith.addf %74, %76 : vector<8x28xf32>
    %cst_15 = arith.constant 0.000000e+00 : f32
    %78 = vector.broadcast %cst_15 : f32 to vector<8x28xf32>
    %79 = arith.maximumf %77, %78 : vector<8x28xf32>
    %80 = vector.extract_strided_slice %0 {offsets = [0, 11], sizes = [8, 1], strides = [1, 1]} : vector<8x36xf32> to vector<8x1xf32>
    %81 = vector.extract_strided_slice %79 {offsets = [0, 0], sizes = [8, 24], strides = [1, 1]} : vector<8x28xf32> to vector<8x24xf32>
    %82 = vector.broadcast %80 : vector<8x1xf32> to vector<8x24xf32>
    %83 = arith.mulf %82, %81 : vector<8x24xf32>
    %84 = vector.extract_strided_slice %0 {offsets = [0, 12], sizes = [8, 1], strides = [1, 1]} : vector<8x36xf32> to vector<8x1xf32>
    %85 = vector.extract_strided_slice %79 {offsets = [0, 1], sizes = [8, 24], strides = [1, 1]} : vector<8x28xf32> to vector<8x24xf32>
    %86 = vector.broadcast %84 : vector<8x1xf32> to vector<8x24xf32>
    %87 = arith.mulf %86, %85 : vector<8x24xf32>
    %88 = arith.addf %83, %87 : vector<8x24xf32>
    %89 = vector.extract_strided_slice %0 {offsets = [0, 13], sizes = [8, 1], strides = [1, 1]} : vector<8x36xf32> to vector<8x1xf32>
    %90 = vector.extract_strided_slice %79 {offsets = [0, 2], sizes = [8, 24], strides = [1, 1]} : vector<8x28xf32> to vector<8x24xf32>
    %91 = vector.broadcast %89 : vector<8x1xf32> to vector<8x24xf32>
    %92 = arith.mulf %91, %90 : vector<8x24xf32>
    %93 = arith.addf %88, %92 : vector<8x24xf32>
    %94 = vector.extract_strided_slice %0 {offsets = [0, 14], sizes = [8, 1], strides = [1, 1]} : vector<8x36xf32> to vector<8x1xf32>
    %95 = vector.extract_strided_slice %79 {offsets = [0, 3], sizes = [8, 24], strides = [1, 1]} : vector<8x28xf32> to vector<8x24xf32>
    %96 = vector.broadcast %94 : vector<8x1xf32> to vector<8x24xf32>
    %97 = arith.mulf %96, %95 : vector<8x24xf32>
    %98 = arith.addf %93, %97 : vector<8x24xf32>
    %99 = vector.extract_strided_slice %0 {offsets = [0, 15], sizes = [8, 1], strides = [1, 1]} : vector<8x36xf32> to vector<8x1xf32>
    %100 = vector.extract_strided_slice %79 {offsets = [0, 4], sizes = [8, 24], strides = [1, 1]} : vector<8x28xf32> to vector<8x24xf32>
    %101 = vector.broadcast %99 : vector<8x1xf32> to vector<8x24xf32>
    %102 = arith.mulf %101, %100 : vector<8x24xf32>
    %103 = arith.addf %98, %102 : vector<8x24xf32>
    %104 = vector.extract_strided_slice %1 {offsets = [0, 3], sizes = [8, 1], strides = [1, 1]} : vector<8x8xf32> to vector<8x1xf32>
    %105 = vector.broadcast %104 : vector<8x1xf32> to vector<8x24xf32>
    %106 = arith.addf %103, %105 : vector<8x24xf32>
    %cst_16 = arith.constant 0.000000e+00 : f32
    %107 = vector.broadcast %cst_16 : f32 to vector<8x24xf32>
    %108 = arith.maximumf %106, %107 : vector<8x24xf32>
    %cst_17 = arith.constant dense<0.000000e+00> : vector<8xf32>
    %109 = vector.multi_reduction <add>, %108, %cst_17 [1] : vector<8x24xf32> to vector<8xf32>
    %110 = vector.shape_cast %109 : vector<8xf32> to vector<8x1xf32>
    %cst_18 = arith.constant 2.400000e+01 : f32
    %111 = vector.broadcast %cst_18 : f32 to vector<8x1xf32>
    %112 = arith.divf %110, %111 : vector<8x1xf32>
    %113 = vector.extract_strided_slice %0 {offsets = [0, 16], sizes = [8, 1], strides = [1, 1]} : vector<8x36xf32> to vector<8x1xf32>
    %114 = vector.extract_strided_slice %8 {offsets = [0, 0], sizes = [8, 23], strides = [1, 1]} : vector<8x128xf32> to vector<8x23xf32>
    %115 = vector.broadcast %113 : vector<8x1xf32> to vector<8x23xf32>
    %116 = arith.mulf %115, %114 : vector<8x23xf32>
    %117 = vector.extract_strided_slice %0 {offsets = [0, 17], sizes = [8, 1], strides = [1, 1]} : vector<8x36xf32> to vector<8x1xf32>
    %118 = vector.extract_strided_slice %8 {offsets = [0, 1], sizes = [8, 23], strides = [1, 1]} : vector<8x128xf32> to vector<8x23xf32>
    %119 = vector.broadcast %117 : vector<8x1xf32> to vector<8x23xf32>
    %120 = arith.mulf %119, %118 : vector<8x23xf32>
    %121 = arith.addf %116, %120 : vector<8x23xf32>
    %122 = vector.extract_strided_slice %0 {offsets = [0, 18], sizes = [8, 1], strides = [1, 1]} : vector<8x36xf32> to vector<8x1xf32>
    %123 = vector.extract_strided_slice %8 {offsets = [0, 2], sizes = [8, 23], strides = [1, 1]} : vector<8x128xf32> to vector<8x23xf32>
    %124 = vector.broadcast %122 : vector<8x1xf32> to vector<8x23xf32>
    %125 = arith.mulf %124, %123 : vector<8x23xf32>
    %126 = arith.addf %121, %125 : vector<8x23xf32>
    %127 = vector.extract_strided_slice %0 {offsets = [0, 19], sizes = [8, 1], strides = [1, 1]} : vector<8x36xf32> to vector<8x1xf32>
    %128 = vector.extract_strided_slice %8 {offsets = [0, 3], sizes = [8, 23], strides = [1, 1]} : vector<8x128xf32> to vector<8x23xf32>
    %129 = vector.broadcast %127 : vector<8x1xf32> to vector<8x23xf32>
    %130 = arith.mulf %129, %128 : vector<8x23xf32>
    %131 = arith.addf %126, %130 : vector<8x23xf32>
    %132 = vector.extract_strided_slice %0 {offsets = [0, 20], sizes = [8, 1], strides = [1, 1]} : vector<8x36xf32> to vector<8x1xf32>
    %133 = vector.extract_strided_slice %8 {offsets = [0, 4], sizes = [8, 23], strides = [1, 1]} : vector<8x128xf32> to vector<8x23xf32>
    %134 = vector.broadcast %132 : vector<8x1xf32> to vector<8x23xf32>
    %135 = arith.mulf %134, %133 : vector<8x23xf32>
    %136 = arith.addf %131, %135 : vector<8x23xf32>
    %137 = vector.extract_strided_slice %0 {offsets = [0, 21], sizes = [8, 1], strides = [1, 1]} : vector<8x36xf32> to vector<8x1xf32>
    %138 = vector.extract_strided_slice %8 {offsets = [0, 5], sizes = [8, 23], strides = [1, 1]} : vector<8x128xf32> to vector<8x23xf32>
    %139 = vector.broadcast %137 : vector<8x1xf32> to vector<8x23xf32>
    %140 = arith.mulf %139, %138 : vector<8x23xf32>
    %141 = arith.addf %136, %140 : vector<8x23xf32>
    %142 = vector.extract_strided_slice %0 {offsets = [0, 22], sizes = [8, 1], strides = [1, 1]} : vector<8x36xf32> to vector<8x1xf32>
    %143 = vector.extract_strided_slice %8 {offsets = [0, 6], sizes = [8, 23], strides = [1, 1]} : vector<8x128xf32> to vector<8x23xf32>
    %144 = vector.broadcast %142 : vector<8x1xf32> to vector<8x23xf32>
    %145 = arith.mulf %144, %143 : vector<8x23xf32>
    %146 = arith.addf %141, %145 : vector<8x23xf32>
    %147 = vector.extract_strided_slice %0 {offsets = [0, 23], sizes = [8, 1], strides = [1, 1]} : vector<8x36xf32> to vector<8x1xf32>
    %148 = vector.extract_strided_slice %8 {offsets = [0, 7], sizes = [8, 23], strides = [1, 1]} : vector<8x128xf32> to vector<8x23xf32>
    %149 = vector.broadcast %147 : vector<8x1xf32> to vector<8x23xf32>
    %150 = arith.mulf %149, %148 : vector<8x23xf32>
    %151 = arith.addf %146, %150 : vector<8x23xf32>
    %152 = vector.extract_strided_slice %0 {offsets = [0, 24], sizes = [8, 1], strides = [1, 1]} : vector<8x36xf32> to vector<8x1xf32>
    %153 = vector.extract_strided_slice %8 {offsets = [0, 8], sizes = [8, 23], strides = [1, 1]} : vector<8x128xf32> to vector<8x23xf32>
    %154 = vector.broadcast %152 : vector<8x1xf32> to vector<8x23xf32>
    %155 = arith.mulf %154, %153 : vector<8x23xf32>
    %156 = arith.addf %151, %155 : vector<8x23xf32>
    %157 = vector.extract_strided_slice %0 {offsets = [0, 25], sizes = [8, 1], strides = [1, 1]} : vector<8x36xf32> to vector<8x1xf32>
    %158 = vector.extract_strided_slice %8 {offsets = [0, 9], sizes = [8, 23], strides = [1, 1]} : vector<8x128xf32> to vector<8x23xf32>
    %159 = vector.broadcast %157 : vector<8x1xf32> to vector<8x23xf32>
    %160 = arith.mulf %159, %158 : vector<8x23xf32>
    %161 = arith.addf %156, %160 : vector<8x23xf32>
    %162 = vector.extract_strided_slice %1 {offsets = [0, 4], sizes = [8, 1], strides = [1, 1]} : vector<8x8xf32> to vector<8x1xf32>
    %163 = vector.broadcast %162 : vector<8x1xf32> to vector<8x23xf32>
    %164 = arith.addf %161, %163 : vector<8x23xf32>
    %cst_19 = arith.constant 0.000000e+00 : f32
    %165 = vector.broadcast %cst_19 : f32 to vector<8x23xf32>
    %166 = arith.maximumf %164, %165 : vector<8x23xf32>
    %167 = vector.extract_strided_slice %0 {offsets = [0, 26], sizes = [8, 1], strides = [1, 1]} : vector<8x36xf32> to vector<8x1xf32>
    %168 = vector.extract_strided_slice %166 {offsets = [0, 0], sizes = [8, 14], strides = [1, 1]} : vector<8x23xf32> to vector<8x14xf32>
    %169 = vector.broadcast %167 : vector<8x1xf32> to vector<8x14xf32>
    %170 = arith.mulf %169, %168 : vector<8x14xf32>
    %171 = vector.extract_strided_slice %0 {offsets = [0, 27], sizes = [8, 1], strides = [1, 1]} : vector<8x36xf32> to vector<8x1xf32>
    %172 = vector.extract_strided_slice %166 {offsets = [0, 1], sizes = [8, 14], strides = [1, 1]} : vector<8x23xf32> to vector<8x14xf32>
    %173 = vector.broadcast %171 : vector<8x1xf32> to vector<8x14xf32>
    %174 = arith.mulf %173, %172 : vector<8x14xf32>
    %175 = arith.addf %170, %174 : vector<8x14xf32>
    %176 = vector.extract_strided_slice %0 {offsets = [0, 28], sizes = [8, 1], strides = [1, 1]} : vector<8x36xf32> to vector<8x1xf32>
    %177 = vector.extract_strided_slice %166 {offsets = [0, 2], sizes = [8, 14], strides = [1, 1]} : vector<8x23xf32> to vector<8x14xf32>
    %178 = vector.broadcast %176 : vector<8x1xf32> to vector<8x14xf32>
    %179 = arith.mulf %178, %177 : vector<8x14xf32>
    %180 = arith.addf %175, %179 : vector<8x14xf32>
    %181 = vector.extract_strided_slice %0 {offsets = [0, 29], sizes = [8, 1], strides = [1, 1]} : vector<8x36xf32> to vector<8x1xf32>
    %182 = vector.extract_strided_slice %166 {offsets = [0, 3], sizes = [8, 14], strides = [1, 1]} : vector<8x23xf32> to vector<8x14xf32>
    %183 = vector.broadcast %181 : vector<8x1xf32> to vector<8x14xf32>
    %184 = arith.mulf %183, %182 : vector<8x14xf32>
    %185 = arith.addf %180, %184 : vector<8x14xf32>
    %186 = vector.extract_strided_slice %0 {offsets = [0, 30], sizes = [8, 1], strides = [1, 1]} : vector<8x36xf32> to vector<8x1xf32>
    %187 = vector.extract_strided_slice %166 {offsets = [0, 4], sizes = [8, 14], strides = [1, 1]} : vector<8x23xf32> to vector<8x14xf32>
    %188 = vector.broadcast %186 : vector<8x1xf32> to vector<8x14xf32>
    %189 = arith.mulf %188, %187 : vector<8x14xf32>
    %190 = arith.addf %185, %189 : vector<8x14xf32>
    %191 = vector.extract_strided_slice %0 {offsets = [0, 31], sizes = [8, 1], strides = [1, 1]} : vector<8x36xf32> to vector<8x1xf32>
    %192 = vector.extract_strided_slice %166 {offsets = [0, 5], sizes = [8, 14], strides = [1, 1]} : vector<8x23xf32> to vector<8x14xf32>
    %193 = vector.broadcast %191 : vector<8x1xf32> to vector<8x14xf32>
    %194 = arith.mulf %193, %192 : vector<8x14xf32>
    %195 = arith.addf %190, %194 : vector<8x14xf32>
    %196 = vector.extract_strided_slice %0 {offsets = [0, 32], sizes = [8, 1], strides = [1, 1]} : vector<8x36xf32> to vector<8x1xf32>
    %197 = vector.extract_strided_slice %166 {offsets = [0, 6], sizes = [8, 14], strides = [1, 1]} : vector<8x23xf32> to vector<8x14xf32>
    %198 = vector.broadcast %196 : vector<8x1xf32> to vector<8x14xf32>
    %199 = arith.mulf %198, %197 : vector<8x14xf32>
    %200 = arith.addf %195, %199 : vector<8x14xf32>
    %201 = vector.extract_strided_slice %0 {offsets = [0, 33], sizes = [8, 1], strides = [1, 1]} : vector<8x36xf32> to vector<8x1xf32>
    %202 = vector.extract_strided_slice %166 {offsets = [0, 7], sizes = [8, 14], strides = [1, 1]} : vector<8x23xf32> to vector<8x14xf32>
    %203 = vector.broadcast %201 : vector<8x1xf32> to vector<8x14xf32>
    %204 = arith.mulf %203, %202 : vector<8x14xf32>
    %205 = arith.addf %200, %204 : vector<8x14xf32>
    %206 = vector.extract_strided_slice %0 {offsets = [0, 34], sizes = [8, 1], strides = [1, 1]} : vector<8x36xf32> to vector<8x1xf32>
    %207 = vector.extract_strided_slice %166 {offsets = [0, 8], sizes = [8, 14], strides = [1, 1]} : vector<8x23xf32> to vector<8x14xf32>
    %208 = vector.broadcast %206 : vector<8x1xf32> to vector<8x14xf32>
    %209 = arith.mulf %208, %207 : vector<8x14xf32>
    %210 = arith.addf %205, %209 : vector<8x14xf32>
    %211 = vector.extract_strided_slice %0 {offsets = [0, 35], sizes = [8, 1], strides = [1, 1]} : vector<8x36xf32> to vector<8x1xf32>
    %212 = vector.extract_strided_slice %166 {offsets = [0, 9], sizes = [8, 14], strides = [1, 1]} : vector<8x23xf32> to vector<8x14xf32>
    %213 = vector.broadcast %211 : vector<8x1xf32> to vector<8x14xf32>
    %214 = arith.mulf %213, %212 : vector<8x14xf32>
    %215 = arith.addf %210, %214 : vector<8x14xf32>
    %216 = vector.extract_strided_slice %1 {offsets = [0, 5], sizes = [8, 1], strides = [1, 1]} : vector<8x8xf32> to vector<8x1xf32>
    %217 = vector.broadcast %216 : vector<8x1xf32> to vector<8x14xf32>
    %218 = arith.addf %215, %217 : vector<8x14xf32>
    %cst_20 = arith.constant 0.000000e+00 : f32
    %219 = vector.broadcast %cst_20 : f32 to vector<8x14xf32>
    %220 = arith.maximumf %218, %219 : vector<8x14xf32>
    %cst_21 = arith.constant dense<0.000000e+00> : vector<8xf32>
    %221 = vector.multi_reduction <add>, %220, %cst_21 [1] : vector<8x14xf32> to vector<8xf32>
    %222 = vector.shape_cast %221 : vector<8xf32> to vector<8x1xf32>
    %cst_22 = arith.constant 1.400000e+01 : f32
    %223 = vector.broadcast %cst_22 : f32 to vector<8x1xf32>
    %224 = arith.divf %222, %223 : vector<8x1xf32>
    %225 = vector.extract_strided_slice %4 {offsets = [0, 0], sizes = [1, 1], strides = [1, 1]} : vector<1x4xf32> to vector<1x1xf32>
    %226 = vector.broadcast %225 : vector<1x1xf32> to vector<8x1xf32>
    %227 = arith.mulf %50, %226 : vector<8x1xf32>
    %228 = vector.extract_strided_slice %4 {offsets = [0, 1], sizes = [1, 1], strides = [1, 1]} : vector<1x4xf32> to vector<1x1xf32>
    %229 = vector.broadcast %228 : vector<1x1xf32> to vector<8x1xf32>
    %230 = arith.mulf %112, %229 : vector<8x1xf32>
    %231 = arith.addf %227, %230 : vector<8x1xf32>
    %232 = vector.extract_strided_slice %4 {offsets = [0, 2], sizes = [1, 1], strides = [1, 1]} : vector<1x4xf32> to vector<1x1xf32>
    %233 = vector.broadcast %232 : vector<1x1xf32> to vector<8x1xf32>
    %234 = arith.mulf %224, %233 : vector<8x1xf32>
    %235 = arith.addf %231, %234 : vector<8x1xf32>
    %236 = vector.extract_strided_slice %4 {offsets = [0, 3], sizes = [1, 1], strides = [1, 1]} : vector<1x4xf32> to vector<1x1xf32>
    %237 = vector.broadcast %236 : vector<1x1xf32> to vector<8x1xf32>
    %238 = arith.addf %235, %237 : vector<8x1xf32>
    %cst_23 = arith.constant dense<0.000000e+00> : vector<4x1xf32>
    %239 = tpu.matmul %2, %238, %cst_23 {dimension_numbers = #tpu.dot_dimension_numbers<[1], [0], [0], [1], [0, 0, 1, 1], [], []>} : vector<4x8xf32>, vector<8x1xf32>, vector<4x1xf32> -> vector<4x1xf32>
    %240 = arith.addf %239, %5 : vector<4x1xf32>
    %cst_24 = arith.constant 0.000000e+00 : f32
    %241 = vector.broadcast %cst_24 : f32 to vector<4x1xf32>
    %242 = arith.maximumf %240, %241 : vector<4x1xf32>
    %cst_25 = arith.constant dense<0.000000e+00> : vector<8x1xf32>
    %243 = tpu.matmul %3, %242, %cst_25 {dimension_numbers = #tpu.dot_dimension_numbers<[1], [0], [0], [1], [0, 0, 1, 1], [], []>} : vector<8x4xf32>, vector<4x1xf32>, vector<8x1xf32> -> vector<8x1xf32>
    %244 = arith.addf %243, %6 : vector<8x1xf32>
    %cst_26 = arith.constant 0.000000e+00 : f32
    %245 = vector.broadcast %cst_26 : f32 to vector<8x1xf32>
    %246 = arith.subf %245, %244 : vector<8x1xf32>
    %247 = math.exp %246 : vector<8x1xf32>
    %cst_27 = arith.constant 1.000000e+00 : f32
    %248 = vector.broadcast %cst_27 : f32 to vector<8x1xf32>
    %249 = arith.addf %248, %247 : vector<8x1xf32>
    %cst_28 = arith.constant 1.000000e+00 : f32
    %250 = vector.broadcast %cst_28 : f32 to vector<8x1xf32>
    %251 = arith.divf %250, %249 : vector<8x1xf32>
    %252 = vector.broadcast %251 : vector<8x1xf32> to vector<8x128xf32>
    %253 = arith.mulf %8, %252 : vector<8x128xf32>
    %c0_29 = arith.constant 0 : index
    %c0_30 = arith.constant 0 : index
    %c0_31 = arith.constant 0 : index
    %254 = vector.load %arg7[%c0_29, %c0_30, %c0_31] : memref<2x8x128xf32, #tpu.memory_space<vmem>>, vector<1x8x128xf32>
    %255 = vector.shape_cast %254 : vector<1x8x128xf32> to vector<8x128xf32>
    %256 = vector.shape_cast %253 : vector<8x128xf32> to vector<1x8x128xf32>
    tpu.vector_store %arg7[%c0_29, %c0_30, %c0_31], %256 {strides = array<i32>} : memref<2x8x128xf32, #tpu.memory_space<vmem>>, vector<1x8x128xf32>,
    %c1 = arith.constant 1 : index
    %c0_32 = arith.constant 0 : index
    %c0_33 = arith.constant 0 : index
    %257 = vector.load %arg1[%c1, %c0_32, %c0_33] : memref<2x8x128xf32, #tpu.memory_space<vmem>>, vector<1x8x128xf32>
    %258 = vector.shape_cast %257 : vector<1x8x128xf32> to vector<8x128xf32>
    %259 = vector.extract_strided_slice %0 {offsets = [0, 0], sizes = [8, 1], strides = [1, 1]} : vector<8x36xf32> to vector<8x1xf32>
    %260 = vector.extract_strided_slice %258 {offsets = [0, 0], sizes = [8, 30], strides = [1, 1]} : vector<8x128xf32> to vector<8x30xf32>
    %261 = vector.broadcast %259 : vector<8x1xf32> to vector<8x30xf32>
    %262 = arith.mulf %261, %260 : vector<8x30xf32>
    %263 = vector.extract_strided_slice %0 {offsets = [0, 1], sizes = [8, 1], strides = [1, 1]} : vector<8x36xf32> to vector<8x1xf32>
    %264 = vector.extract_strided_slice %258 {offsets = [0, 1], sizes = [8, 30], strides = [1, 1]} : vector<8x128xf32> to vector<8x30xf32>
    %265 = vector.broadcast %263 : vector<8x1xf32> to vector<8x30xf32>
    %266 = arith.mulf %265, %264 : vector<8x30xf32>
    %267 = arith.addf %262, %266 : vector<8x30xf32>
    %268 = vector.extract_strided_slice %0 {offsets = [0, 2], sizes = [8, 1], strides = [1, 1]} : vector<8x36xf32> to vector<8x1xf32>
    %269 = vector.extract_strided_slice %258 {offsets = [0, 2], sizes = [8, 30], strides = [1, 1]} : vector<8x128xf32> to vector<8x30xf32>
    %270 = vector.broadcast %268 : vector<8x1xf32> to vector<8x30xf32>
    %271 = arith.mulf %270, %269 : vector<8x30xf32>
    %272 = arith.addf %267, %271 : vector<8x30xf32>
    %273 = vector.extract_strided_slice %1 {offsets = [0, 0], sizes = [8, 1], strides = [1, 1]} : vector<8x8xf32> to vector<8x1xf32>
    %274 = vector.broadcast %273 : vector<8x1xf32> to vector<8x30xf32>
    %275 = arith.addf %272, %274 : vector<8x30xf32>
    %cst_34 = arith.constant 0.000000e+00 : f32
    %276 = vector.broadcast %cst_34 : f32 to vector<8x30xf32>
    %277 = arith.maximumf %275, %276 : vector<8x30xf32>
    %278 = vector.extract_strided_slice %0 {offsets = [0, 3], sizes = [8, 1], strides = [1, 1]} : vector<8x36xf32> to vector<8x1xf32>
    %279 = vector.extract_strided_slice %277 {offsets = [0, 0], sizes = [8, 28], strides = [1, 1]} : vector<8x30xf32> to vector<8x28xf32>
    %280 = vector.broadcast %278 : vector<8x1xf32> to vector<8x28xf32>
    %281 = arith.mulf %280, %279 : vector<8x28xf32>
    %282 = vector.extract_strided_slice %0 {offsets = [0, 4], sizes = [8, 1], strides = [1, 1]} : vector<8x36xf32> to vector<8x1xf32>
    %283 = vector.extract_strided_slice %277 {offsets = [0, 1], sizes = [8, 28], strides = [1, 1]} : vector<8x30xf32> to vector<8x28xf32>
    %284 = vector.broadcast %282 : vector<8x1xf32> to vector<8x28xf32>
    %285 = arith.mulf %284, %283 : vector<8x28xf32>
    %286 = arith.addf %281, %285 : vector<8x28xf32>
    %287 = vector.extract_strided_slice %0 {offsets = [0, 5], sizes = [8, 1], strides = [1, 1]} : vector<8x36xf32> to vector<8x1xf32>
    %288 = vector.extract_strided_slice %277 {offsets = [0, 2], sizes = [8, 28], strides = [1, 1]} : vector<8x30xf32> to vector<8x28xf32>
    %289 = vector.broadcast %287 : vector<8x1xf32> to vector<8x28xf32>
    %290 = arith.mulf %289, %288 : vector<8x28xf32>
    %291 = arith.addf %286, %290 : vector<8x28xf32>
    %292 = vector.extract_strided_slice %1 {offsets = [0, 1], sizes = [8, 1], strides = [1, 1]} : vector<8x8xf32> to vector<8x1xf32>
    %293 = vector.broadcast %292 : vector<8x1xf32> to vector<8x28xf32>
    %294 = arith.addf %291, %293 : vector<8x28xf32>
    %cst_35 = arith.constant 0.000000e+00 : f32
    %295 = vector.broadcast %cst_35 : f32 to vector<8x28xf32>
    %296 = arith.maximumf %294, %295 : vector<8x28xf32>
    %cst_36 = arith.constant dense<0.000000e+00> : vector<8xf32>
    %297 = vector.multi_reduction <add>, %296, %cst_36 [1] : vector<8x28xf32> to vector<8xf32>
    %298 = vector.shape_cast %297 : vector<8xf32> to vector<8x1xf32>
    %cst_37 = arith.constant 2.800000e+01 : f32
    %299 = vector.broadcast %cst_37 : f32 to vector<8x1xf32>
    %300 = arith.divf %298, %299 : vector<8x1xf32>
    %301 = vector.extract_strided_slice %0 {offsets = [0, 6], sizes = [8, 1], strides = [1, 1]} : vector<8x36xf32> to vector<8x1xf32>
    %302 = vector.extract_strided_slice %258 {offsets = [0, 0], sizes = [8, 28], strides = [1, 1]} : vector<8x128xf32> to vector<8x28xf32>
    %303 = vector.broadcast %301 : vector<8x1xf32> to vector<8x28xf32>
    %304 = arith.mulf %303, %302 : vector<8x28xf32>
    %305 = vector.extract_strided_slice %0 {offsets = [0, 7], sizes = [8, 1], strides = [1, 1]} : vector<8x36xf32> to vector<8x1xf32>
    %306 = vector.extract_strided_slice %258 {offsets = [0, 1], sizes = [8, 28], strides = [1, 1]} : vector<8x128xf32> to vector<8x28xf32>
    %307 = vector.broadcast %305 : vector<8x1xf32> to vector<8x28xf32>
    %308 = arith.mulf %307, %306 : vector<8x28xf32>
    %309 = arith.addf %304, %308 : vector<8x28xf32>
    %310 = vector.extract_strided_slice %0 {offsets = [0, 8], sizes = [8, 1], strides = [1, 1]} : vector<8x36xf32> to vector<8x1xf32>
    %311 = vector.extract_strided_slice %258 {offsets = [0, 2], sizes = [8, 28], strides = [1, 1]} : vector<8x128xf32> to vector<8x28xf32>
    %312 = vector.broadcast %310 : vector<8x1xf32> to vector<8x28xf32>
    %313 = arith.mulf %312, %311 : vector<8x28xf32>
    %314 = arith.addf %309, %313 : vector<8x28xf32>
    %315 = vector.extract_strided_slice %0 {offsets = [0, 9], sizes = [8, 1], strides = [1, 1]} : vector<8x36xf32> to vector<8x1xf32>
    %316 = vector.extract_strided_slice %258 {offsets = [0, 3], sizes = [8, 28], strides = [1, 1]} : vector<8x128xf32> to vector<8x28xf32>
    %317 = vector.broadcast %315 : vector<8x1xf32> to vector<8x28xf32>
    %318 = arith.mulf %317, %316 : vector<8x28xf32>
    %319 = arith.addf %314, %318 : vector<8x28xf32>
    %320 = vector.extract_strided_slice %0 {offsets = [0, 10], sizes = [8, 1], strides = [1, 1]} : vector<8x36xf32> to vector<8x1xf32>
    %321 = vector.extract_strided_slice %258 {offsets = [0, 4], sizes = [8, 28], strides = [1, 1]} : vector<8x128xf32> to vector<8x28xf32>
    %322 = vector.broadcast %320 : vector<8x1xf32> to vector<8x28xf32>
    %323 = arith.mulf %322, %321 : vector<8x28xf32>
    %324 = arith.addf %319, %323 : vector<8x28xf32>
    %325 = vector.extract_strided_slice %1 {offsets = [0, 2], sizes = [8, 1], strides = [1, 1]} : vector<8x8xf32> to vector<8x1xf32>
    %326 = vector.broadcast %325 : vector<8x1xf32> to vector<8x28xf32>
    %327 = arith.addf %324, %326 : vector<8x28xf32>
    %cst_38 = arith.constant 0.000000e+00 : f32
    %328 = vector.broadcast %cst_38 : f32 to vector<8x28xf32>
    %329 = arith.maximumf %327, %328 : vector<8x28xf32>
    %330 = vector.extract_strided_slice %0 {offsets = [0, 11], sizes = [8, 1], strides = [1, 1]} : vector<8x36xf32> to vector<8x1xf32>
    %331 = vector.extract_strided_slice %329 {offsets = [0, 0], sizes = [8, 24], strides = [1, 1]} : vector<8x28xf32> to vector<8x24xf32>
    %332 = vector.broadcast %330 : vector<8x1xf32> to vector<8x24xf32>
    %333 = arith.mulf %332, %331 : vector<8x24xf32>
    %334 = vector.extract_strided_slice %0 {offsets = [0, 12], sizes = [8, 1], strides = [1, 1]} : vector<8x36xf32> to vector<8x1xf32>
    %335 = vector.extract_strided_slice %329 {offsets = [0, 1], sizes = [8, 24], strides = [1, 1]} : vector<8x28xf32> to vector<8x24xf32>
    %336 = vector.broadcast %334 : vector<8x1xf32> to vector<8x24xf32>
    %337 = arith.mulf %336, %335 : vector<8x24xf32>
    %338 = arith.addf %333, %337 : vector<8x24xf32>
    %339 = vector.extract_strided_slice %0 {offsets = [0, 13], sizes = [8, 1], strides = [1, 1]} : vector<8x36xf32> to vector<8x1xf32>
    %340 = vector.extract_strided_slice %329 {offsets = [0, 2], sizes = [8, 24], strides = [1, 1]} : vector<8x28xf32> to vector<8x24xf32>
    %341 = vector.broadcast %339 : vector<8x1xf32> to vector<8x24xf32>
    %342 = arith.mulf %341, %340 : vector<8x24xf32>
    %343 = arith.addf %338, %342 : vector<8x24xf32>
    %344 = vector.extract_strided_slice %0 {offsets = [0, 14], sizes = [8, 1], strides = [1, 1]} : vector<8x36xf32> to vector<8x1xf32>
    %345 = vector.extract_strided_slice %329 {offsets = [0, 3], sizes = [8, 24], strides = [1, 1]} : vector<8x28xf32> to vector<8x24xf32>
    %346 = vector.broadcast %344 : vector<8x1xf32> to vector<8x24xf32>
    %347 = arith.mulf %346, %345 : vector<8x24xf32>
    %348 = arith.addf %343, %347 : vector<8x24xf32>
    %349 = vector.extract_strided_slice %0 {offsets = [0, 15], sizes = [8, 1], strides = [1, 1]} : vector<8x36xf32> to vector<8x1xf32>
    %350 = vector.extract_strided_slice %329 {offsets = [0, 4], sizes = [8, 24], strides = [1, 1]} : vector<8x28xf32> to vector<8x24xf32>
    %351 = vector.broadcast %349 : vector<8x1xf32> to vector<8x24xf32>
    %352 = arith.mulf %351, %350 : vector<8x24xf32>
    %353 = arith.addf %348, %352 : vector<8x24xf32>
    %354 = vector.extract_strided_slice %1 {offsets = [0, 3], sizes = [8, 1], strides = [1, 1]} : vector<8x8xf32> to vector<8x1xf32>
    %355 = vector.broadcast %354 : vector<8x1xf32> to vector<8x24xf32>
    %356 = arith.addf %353, %355 : vector<8x24xf32>
    %cst_39 = arith.constant 0.000000e+00 : f32
    %357 = vector.broadcast %cst_39 : f32 to vector<8x24xf32>
    %358 = arith.maximumf %356, %357 : vector<8x24xf32>
    %cst_40 = arith.constant dense<0.000000e+00> : vector<8xf32>
    %359 = vector.multi_reduction <add>, %358, %cst_40 [1] : vector<8x24xf32> to vector<8xf32>
    %360 = vector.shape_cast %359 : vector<8xf32> to vector<8x1xf32>
    %cst_41 = arith.constant 2.400000e+01 : f32
    %361 = vector.broadcast %cst_41 : f32 to vector<8x1xf32>
    %362 = arith.divf %360, %361 : vector<8x1xf32>
    %363 = vector.extract_strided_slice %0 {offsets = [0, 16], sizes = [8, 1], strides = [1, 1]} : vector<8x36xf32> to vector<8x1xf32>
    %364 = vector.extract_strided_slice %258 {offsets = [0, 0], sizes = [8, 23], strides = [1, 1]} : vector<8x128xf32> to vector<8x23xf32>
    %365 = vector.broadcast %363 : vector<8x1xf32> to vector<8x23xf32>
    %366 = arith.mulf %365, %364 : vector<8x23xf32>
    %367 = vector.extract_strided_slice %0 {offsets = [0, 17], sizes = [8, 1], strides = [1, 1]} : vector<8x36xf32> to vector<8x1xf32>
    %368 = vector.extract_strided_slice %258 {offsets = [0, 1], sizes = [8, 23], strides = [1, 1]} : vector<8x128xf32> to vector<8x23xf32>
    %369 = vector.broadcast %367 : vector<8x1xf32> to vector<8x23xf32>
    %370 = arith.mulf %369, %368 : vector<8x23xf32>
    %371 = arith.addf %366, %370 : vector<8x23xf32>
    %372 = vector.extract_strided_slice %0 {offsets = [0, 18], sizes = [8, 1], strides = [1, 1]} : vector<8x36xf32> to vector<8x1xf32>
    %373 = vector.extract_strided_slice %258 {offsets = [0, 2], sizes = [8, 23], strides = [1, 1]} : vector<8x128xf32> to vector<8x23xf32>
    %374 = vector.broadcast %372 : vector<8x1xf32> to vector<8x23xf32>
    %375 = arith.mulf %374, %373 : vector<8x23xf32>
    %376 = arith.addf %371, %375 : vector<8x23xf32>
    %377 = vector.extract_strided_slice %0 {offsets = [0, 19], sizes = [8, 1], strides = [1, 1]} : vector<8x36xf32> to vector<8x1xf32>
    %378 = vector.extract_strided_slice %258 {offsets = [0, 3], sizes = [8, 23], strides = [1, 1]} : vector<8x128xf32> to vector<8x23xf32>
    %379 = vector.broadcast %377 : vector<8x1xf32> to vector<8x23xf32>
    %380 = arith.mulf %379, %378 : vector<8x23xf32>
    %381 = arith.addf %376, %380 : vector<8x23xf32>
    %382 = vector.extract_strided_slice %0 {offsets = [0, 20], sizes = [8, 1], strides = [1, 1]} : vector<8x36xf32> to vector<8x1xf32>
    %383 = vector.extract_strided_slice %258 {offsets = [0, 4], sizes = [8, 23], strides = [1, 1]} : vector<8x128xf32> to vector<8x23xf32>
    %384 = vector.broadcast %382 : vector<8x1xf32> to vector<8x23xf32>
    %385 = arith.mulf %384, %383 : vector<8x23xf32>
    %386 = arith.addf %381, %385 : vector<8x23xf32>
    %387 = vector.extract_strided_slice %0 {offsets = [0, 21], sizes = [8, 1], strides = [1, 1]} : vector<8x36xf32> to vector<8x1xf32>
    %388 = vector.extract_strided_slice %258 {offsets = [0, 5], sizes = [8, 23], strides = [1, 1]} : vector<8x128xf32> to vector<8x23xf32>
    %389 = vector.broadcast %387 : vector<8x1xf32> to vector<8x23xf32>
    %390 = arith.mulf %389, %388 : vector<8x23xf32>
    %391 = arith.addf %386, %390 : vector<8x23xf32>
    %392 = vector.extract_strided_slice %0 {offsets = [0, 22], sizes = [8, 1], strides = [1, 1]} : vector<8x36xf32> to vector<8x1xf32>
    %393 = vector.extract_strided_slice %258 {offsets = [0, 6], sizes = [8, 23], strides = [1, 1]} : vector<8x128xf32> to vector<8x23xf32>
    %394 = vector.broadcast %392 : vector<8x1xf32> to vector<8x23xf32>
    %395 = arith.mulf %394, %393 : vector<8x23xf32>
    %396 = arith.addf %391, %395 : vector<8x23xf32>
    %397 = vector.extract_strided_slice %0 {offsets = [0, 23], sizes = [8, 1], strides = [1, 1]} : vector<8x36xf32> to vector<8x1xf32>
    %398 = vector.extract_strided_slice %258 {offsets = [0, 7], sizes = [8, 23], strides = [1, 1]} : vector<8x128xf32> to vector<8x23xf32>
    %399 = vector.broadcast %397 : vector<8x1xf32> to vector<8x23xf32>
    %400 = arith.mulf %399, %398 : vector<8x23xf32>
    %401 = arith.addf %396, %400 : vector<8x23xf32>
    %402 = vector.extract_strided_slice %0 {offsets = [0, 24], sizes = [8, 1], strides = [1, 1]} : vector<8x36xf32> to vector<8x1xf32>
    %403 = vector.extract_strided_slice %258 {offsets = [0, 8], sizes = [8, 23], strides = [1, 1]} : vector<8x128xf32> to vector<8x23xf32>
    %404 = vector.broadcast %402 : vector<8x1xf32> to vector<8x23xf32>
    %405 = arith.mulf %404, %403 : vector<8x23xf32>
    %406 = arith.addf %401, %405 : vector<8x23xf32>
    %407 = vector.extract_strided_slice %0 {offsets = [0, 25], sizes = [8, 1], strides = [1, 1]} : vector<8x36xf32> to vector<8x1xf32>
    %408 = vector.extract_strided_slice %258 {offsets = [0, 9], sizes = [8, 23], strides = [1, 1]} : vector<8x128xf32> to vector<8x23xf32>
    %409 = vector.broadcast %407 : vector<8x1xf32> to vector<8x23xf32>
    %410 = arith.mulf %409, %408 : vector<8x23xf32>
    %411 = arith.addf %406, %410 : vector<8x23xf32>
    %412 = vector.extract_strided_slice %1 {offsets = [0, 4], sizes = [8, 1], strides = [1, 1]} : vector<8x8xf32> to vector<8x1xf32>
    %413 = vector.broadcast %412 : vector<8x1xf32> to vector<8x23xf32>
    %414 = arith.addf %411, %413 : vector<8x23xf32>
    %cst_42 = arith.constant 0.000000e+00 : f32
    %415 = vector.broadcast %cst_42 : f32 to vector<8x23xf32>
    %416 = arith.maximumf %414, %415 : vector<8x23xf32>
    %417 = vector.extract_strided_slice %0 {offsets = [0, 26], sizes = [8, 1], strides = [1, 1]} : vector<8x36xf32> to vector<8x1xf32>
    %418 = vector.extract_strided_slice %416 {offsets = [0, 0], sizes = [8, 14], strides = [1, 1]} : vector<8x23xf32> to vector<8x14xf32>
    %419 = vector.broadcast %417 : vector<8x1xf32> to vector<8x14xf32>
    %420 = arith.mulf %419, %418 : vector<8x14xf32>
    %421 = vector.extract_strided_slice %0 {offsets = [0, 27], sizes = [8, 1], strides = [1, 1]} : vector<8x36xf32> to vector<8x1xf32>
    %422 = vector.extract_strided_slice %416 {offsets = [0, 1], sizes = [8, 14], strides = [1, 1]} : vector<8x23xf32> to vector<8x14xf32>
    %423 = vector.broadcast %421 : vector<8x1xf32> to vector<8x14xf32>
    %424 = arith.mulf %423, %422 : vector<8x14xf32>
    %425 = arith.addf %420, %424 : vector<8x14xf32>
    %426 = vector.extract_strided_slice %0 {offsets = [0, 28], sizes = [8, 1], strides = [1, 1]} : vector<8x36xf32> to vector<8x1xf32>
    %427 = vector.extract_strided_slice %416 {offsets = [0, 2], sizes = [8, 14], strides = [1, 1]} : vector<8x23xf32> to vector<8x14xf32>
    %428 = vector.broadcast %426 : vector<8x1xf32> to vector<8x14xf32>
    %429 = arith.mulf %428, %427 : vector<8x14xf32>
    %430 = arith.addf %425, %429 : vector<8x14xf32>
    %431 = vector.extract_strided_slice %0 {offsets = [0, 29], sizes = [8, 1], strides = [1, 1]} : vector<8x36xf32> to vector<8x1xf32>
    %432 = vector.extract_strided_slice %416 {offsets = [0, 3], sizes = [8, 14], strides = [1, 1]} : vector<8x23xf32> to vector<8x14xf32>
    %433 = vector.broadcast %431 : vector<8x1xf32> to vector<8x14xf32>
    %434 = arith.mulf %433, %432 : vector<8x14xf32>
    %435 = arith.addf %430, %434 : vector<8x14xf32>
    %436 = vector.extract_strided_slice %0 {offsets = [0, 30], sizes = [8, 1], strides = [1, 1]} : vector<8x36xf32> to vector<8x1xf32>
    %437 = vector.extract_strided_slice %416 {offsets = [0, 4], sizes = [8, 14], strides = [1, 1]} : vector<8x23xf32> to vector<8x14xf32>
    %438 = vector.broadcast %436 : vector<8x1xf32> to vector<8x14xf32>
    %439 = arith.mulf %438, %437 : vector<8x14xf32>
    %440 = arith.addf %435, %439 : vector<8x14xf32>
    %441 = vector.extract_strided_slice %0 {offsets = [0, 31], sizes = [8, 1], strides = [1, 1]} : vector<8x36xf32> to vector<8x1xf32>
    %442 = vector.extract_strided_slice %416 {offsets = [0, 5], sizes = [8, 14], strides = [1, 1]} : vector<8x23xf32> to vector<8x14xf32>
    %443 = vector.broadcast %441 : vector<8x1xf32> to vector<8x14xf32>
    %444 = arith.mulf %443, %442 : vector<8x14xf32>
    %445 = arith.addf %440, %444 : vector<8x14xf32>
    %446 = vector.extract_strided_slice %0 {offsets = [0, 32], sizes = [8, 1], strides = [1, 1]} : vector<8x36xf32> to vector<8x1xf32>
    %447 = vector.extract_strided_slice %416 {offsets = [0, 6], sizes = [8, 14], strides = [1, 1]} : vector<8x23xf32> to vector<8x14xf32>
    %448 = vector.broadcast %446 : vector<8x1xf32> to vector<8x14xf32>
    %449 = arith.mulf %448, %447 : vector<8x14xf32>
    %450 = arith.addf %445, %449 : vector<8x14xf32>
    %451 = vector.extract_strided_slice %0 {offsets = [0, 33], sizes = [8, 1], strides = [1, 1]} : vector<8x36xf32> to vector<8x1xf32>
    %452 = vector.extract_strided_slice %416 {offsets = [0, 7], sizes = [8, 14], strides = [1, 1]} : vector<8x23xf32> to vector<8x14xf32>
    %453 = vector.broadcast %451 : vector<8x1xf32> to vector<8x14xf32>
    %454 = arith.mulf %453, %452 : vector<8x14xf32>
    %455 = arith.addf %450, %454 : vector<8x14xf32>
    %456 = vector.extract_strided_slice %0 {offsets = [0, 34], sizes = [8, 1], strides = [1, 1]} : vector<8x36xf32> to vector<8x1xf32>
    %457 = vector.extract_strided_slice %416 {offsets = [0, 8], sizes = [8, 14], strides = [1, 1]} : vector<8x23xf32> to vector<8x14xf32>
    %458 = vector.broadcast %456 : vector<8x1xf32> to vector<8x14xf32>
    %459 = arith.mulf %458, %457 : vector<8x14xf32>
    %460 = arith.addf %455, %459 : vector<8x14xf32>
    %461 = vector.extract_strided_slice %0 {offsets = [0, 35], sizes = [8, 1], strides = [1, 1]} : vector<8x36xf32> to vector<8x1xf32>
    %462 = vector.extract_strided_slice %416 {offsets = [0, 9], sizes = [8, 14], strides = [1, 1]} : vector<8x23xf32> to vector<8x14xf32>
    %463 = vector.broadcast %461 : vector<8x1xf32> to vector<8x14xf32>
    %464 = arith.mulf %463, %462 : vector<8x14xf32>
    %465 = arith.addf %460, %464 : vector<8x14xf32>
    %466 = vector.extract_strided_slice %1 {offsets = [0, 5], sizes = [8, 1], strides = [1, 1]} : vector<8x8xf32> to vector<8x1xf32>
    %467 = vector.broadcast %466 : vector<8x1xf32> to vector<8x14xf32>
    %468 = arith.addf %465, %467 : vector<8x14xf32>
    %cst_43 = arith.constant 0.000000e+00 : f32
    %469 = vector.broadcast %cst_43 : f32 to vector<8x14xf32>
    %470 = arith.maximumf %468, %469 : vector<8x14xf32>
    %cst_44 = arith.constant dense<0.000000e+00> : vector<8xf32>
    %471 = vector.multi_reduction <add>, %470, %cst_44 [1] : vector<8x14xf32> to vector<8xf32>
    %472 = vector.shape_cast %471 : vector<8xf32> to vector<8x1xf32>
    %cst_45 = arith.constant 1.400000e+01 : f32
    %473 = vector.broadcast %cst_45 : f32 to vector<8x1xf32>
    %474 = arith.divf %472, %473 : vector<8x1xf32>
    %475 = vector.extract_strided_slice %4 {offsets = [0, 0], sizes = [1, 1], strides = [1, 1]} : vector<1x4xf32> to vector<1x1xf32>
    %476 = vector.broadcast %475 : vector<1x1xf32> to vector<8x1xf32>
    %477 = arith.mulf %300, %476 : vector<8x1xf32>
    %478 = vector.extract_strided_slice %4 {offsets = [0, 1], sizes = [1, 1], strides = [1, 1]} : vector<1x4xf32> to vector<1x1xf32>
    %479 = vector.broadcast %478 : vector<1x1xf32> to vector<8x1xf32>
    %480 = arith.mulf %362, %479 : vector<8x1xf32>
    %481 = arith.addf %477, %480 : vector<8x1xf32>
    %482 = vector.extract_strided_slice %4 {offsets = [0, 2], sizes = [1, 1], strides = [1, 1]} : vector<1x4xf32> to vector<1x1xf32>
    %483 = vector.broadcast %482 : vector<1x1xf32> to vector<8x1xf32>
    %484 = arith.mulf %474, %483 : vector<8x1xf32>
    %485 = arith.addf %481, %484 : vector<8x1xf32>
    %486 = vector.extract_strided_slice %4 {offsets = [0, 3], sizes = [1, 1], strides = [1, 1]} : vector<1x4xf32> to vector<1x1xf32>
    %487 = vector.broadcast %486 : vector<1x1xf32> to vector<8x1xf32>
    %488 = arith.addf %485, %487 : vector<8x1xf32>
    %cst_46 = arith.constant dense<0.000000e+00> : vector<4x1xf32>
    %489 = tpu.matmul %2, %488, %cst_46 {dimension_numbers = #tpu.dot_dimension_numbers<[1], [0], [0], [1], [0, 0, 1, 1], [], []>} : vector<4x8xf32>, vector<8x1xf32>, vector<4x1xf32> -> vector<4x1xf32>
    %490 = arith.addf %489, %5 : vector<4x1xf32>
    %cst_47 = arith.constant 0.000000e+00 : f32
    %491 = vector.broadcast %cst_47 : f32 to vector<4x1xf32>
    %492 = arith.maximumf %490, %491 : vector<4x1xf32>
    %cst_48 = arith.constant dense<0.000000e+00> : vector<8x1xf32>
    %493 = tpu.matmul %3, %492, %cst_48 {dimension_numbers = #tpu.dot_dimension_numbers<[1], [0], [0], [1], [0, 0, 1, 1], [], []>} : vector<8x4xf32>, vector<4x1xf32>, vector<8x1xf32> -> vector<8x1xf32>
    %494 = arith.addf %493, %6 : vector<8x1xf32>
    %cst_49 = arith.constant 0.000000e+00 : f32
    %495 = vector.broadcast %cst_49 : f32 to vector<8x1xf32>
    %496 = arith.subf %495, %494 : vector<8x1xf32>
    %497 = math.exp %496 : vector<8x1xf32>
    %cst_50 = arith.constant 1.000000e+00 : f32
    %498 = vector.broadcast %cst_50 : f32 to vector<8x1xf32>
    %499 = arith.addf %498, %497 : vector<8x1xf32>
    %cst_51 = arith.constant 1.000000e+00 : f32
    %500 = vector.broadcast %cst_51 : f32 to vector<8x1xf32>
    %501 = arith.divf %500, %499 : vector<8x1xf32>
    %502 = vector.broadcast %501 : vector<8x1xf32> to vector<8x128xf32>
    %503 = arith.mulf %258, %502 : vector<8x128xf32>
    %c1_52 = arith.constant 1 : index
    %c0_53 = arith.constant 0 : index
    %c0_54 = arith.constant 0 : index
    %504 = vector.load %arg7[%c1_52, %c0_53, %c0_54] : memref<2x8x128xf32, #tpu.memory_space<vmem>>, vector<1x8x128xf32>
    %505 = vector.shape_cast %504 : vector<1x8x128xf32> to vector<8x128xf32>
    %506 = vector.shape_cast %503 : vector<8x128xf32> to vector<1x8x128xf32>
    tpu.vector_store %arg7[%c1_52, %c0_53, %c0_54], %506 {strides = array<i32>} : memref<2x8x128xf32, #tpu.memory_space<vmem>>, vector<1x8x128xf32>,
    return
  }
  func.func @transform_0(%arg0: i32) -> (i32, i32, i32) {
    %c0_i32 = arith.constant 0 : i32
    %c0_i32_0 = arith.constant 0 : i32
    %c0_i32_1 = arith.constant 0 : i32
    return %arg0, %c0_i32, %c0_i32_0 : i32, i32, i32
  }
  func.func @transform_1(%arg0: i32) -> (i32, i32) {
    %c0_i32 = arith.constant 0 : i32
    %c0_i32_0 = arith.constant 0 : i32
    %c0_i32_1 = arith.constant 0 : i32
    return %c0_i32, %c0_i32_0 : i32, i32
  }
  func.func @transform_2(%arg0: i32) -> (i32, i32) {
    %c0_i32 = arith.constant 0 : i32
    %c0_i32_0 = arith.constant 0 : i32
    %c0_i32_1 = arith.constant 0 : i32
    return %c0_i32, %c0_i32_0 : i32, i32
  }
  func.func @transform_3(%arg0: i32) -> (i32, i32) {
    %c0_i32 = arith.constant 0 : i32
    %c0_i32_0 = arith.constant 0 : i32
    %c0_i32_1 = arith.constant 0 : i32
    return %c0_i32, %c0_i32_0 : i32, i32
  }
  func.func @transform_4(%arg0: i32) -> (i32, i32) {
    %c0_i32 = arith.constant 0 : i32
    %c0_i32_0 = arith.constant 0 : i32
    %c0_i32_1 = arith.constant 0 : i32
    return %c0_i32, %c0_i32_0 : i32, i32
  }
  func.func @transform_5(%arg0: i32) -> (i32, i32) {
    %c0_i32 = arith.constant 0 : i32
    %c0_i32_0 = arith.constant 0 : i32
    %c0_i32_1 = arith.constant 0 : i32
    return %c0_i32, %c0_i32_0 : i32, i32
  }
  func.func @transform_6(%arg0: i32) -> (i32, i32, i32) {
    %c0_i32 = arith.constant 0 : i32
    %c0_i32_0 = arith.constant 0 : i32
    %c0_i32_1 = arith.constant 0 : i32
    return %arg0, %c0_i32, %c0_i32_0 : i32, i32, i32
  }
}

</mosaic_0001>

<bundles_post_ra>
// kernel: channel_deep_time_sense_se.1
= control target key start
LH: loop header
LB: loop body
LE: loop exit
PB: predicated region body
PF: predicated region fallthrough
CT: control target
= control target key end

     0   :  { %v1173_v1 = vmov 19   ;;  %v1174_v2 = vmov 17   ;;  %s1557_s0 = inlined_call_operand.vmem [shape: f32[2,8,128], index: 0, kind: input, shape index: {}]   ;;  %s1558_s1 = inlined_call_operand.vmem [shape: f32[8,36], index: 1, kind: input, shape index: {}]   ;;  %s1559_s2 = inlined_call_operand.vmem [shape: f32[8,8], index: 2, kind: input, shape index: {}]   ;;  %s1560_s3 = inlined_call_operand.vmem [shape: f32[4,8], index: 3, kind: input, shape index: {}]   ;;  %s1561_s4 = inlined_call_operand.vmem [shape: f32[8,4], index: 4, kind: input, shape index: {}]   ;;  %s1562_s5 = inlined_call_operand.vmem [shape: f32[1,4], index: 5, kind: input, shape index: {}]   ;;  %s1563_s6 = inlined_call_operand.hbm [shape: f32[2,8,128], index: 6, kind: output, shape index: {}]  }
   0x1   :  { %v1261_v0 = vld [vmem:[%s1558_s1] sm:$0xff]  ;;  %1099 = vset.pattern.permute.xlu1 %v1173_v1  ;;  %1097 = vset.pattern.permute.xlu0 %v1174_v2 }
   0x2   :  { %234 = vperm.xlu1 %1099, %v1261_v0   ;;  %214 = vperm.xlu0 %1097, %v1261_v0  }
   0x3   :  { %11 = vsyncpa [#allocation3], 0  ;;  %v1175_v3 = vmov 20   ;;  %v1176_v4 = vmov 18   ;;  %v1177_v5 = vmov 21   ;;  %v1178_v6 = vmov 22  }
   0x4   :  { %v1179_v7 = vmov 23   ;;  %v1180_v8 = vmov 25   ;;  %v1181_v9 = vmov 24   ;;  %v1182_v10 = vmov 9   ;;  %v1278_v13 = vld [vmem:[%s1559_s2] sm:$0xff]  ;;  %s1204_s25 = smov 127  }
   0x5   :  { %v1183_v11 = vmov 7   ;;  %v1184_v12 = vmov 6   ;;  %v1185_v14 = vmov 8   ;;  %v1186_v15 = vmov 4   ;;  %v1303_v33 = vld [vmem:[%s1557_s0] sm:$0xff]  ;;  %v1312_v41 = vld [vmem:[%s1557_s0 + $0x8] sm:$0xff] }
   0x6   :  { %1100 = vset.pattern.permute.xlu1 %v1175_v3  ;;  %1098 = vset.pattern.permute.xlu0 %v1176_v4  ;;  %v1187_v16 = vmov 10   ;;  %v1188_v17 = vmov 27   ;;  %v1189_v18 = vmov 16   ;;  %v1190_v19 = vmov 1   ;;  %s1205_s28 = smov 125   ;;  %s1206_s29 = smov 126  }
   0x7   :  { %244 = vperm.xlu1 %1100, %v1261_v0   ;;  %224 = vperm.xlu0 %1098, %v1261_v0   ;;  %v1191_v20 = vmov 28   ;;  %v1192_v21 = vmov 2   ;;  %v1193_v22 = vmov 12   ;;  %v1194_v23 = vmov 29   ;;  %s1207_s30 = smov 124   ;;  %s1208_s0 = smov 123  }
   0x8   :  { %v1195_v24 = vmov 32   ;;  %v1196_v25 = vmov 30   ;;  %v1197_v26 = vmov 33   ;;  %v1198_v27 = vmov 31   ;;  %s1209_s7 = smov 120   ;;  %s1210_s8 = smov 122  }
   0x9   :  { %v1199_v28 = vmov 34   ;;  %v1200_v29 = vmov 13   ;;  %v1201_v30 = vmov 14   ;;  %v1202_v31 = vmov 15   ;;  %s1211_s9 = smov 119   ;;  %s1212_s10 = smov 121  }
   0xa   :  { %v1203_v32 = vmov 35   ;;  %vm202_vm0 = vcmask 195584   ;;  %vm410_vm1 = vcmask 113664   ;;  %vm94_vm2 = vcmask 228352  }
   0xb   :  { %1101 = vset.pattern.permute.xlu1 %v1177_v5  ;;  %1102 = vset.pattern.permute.xlu0 %v1178_v6  ;;  %vm1219_vm3 = vmmov 0   ;;  %vm442_vm4 = vcmask 64512   ;;  %vm524_vm5 = vcmask 1043456   ;;  %vm520_vm6 = vcmask 31744  }
   0xc   :  { %254 = vperm.xlu1 %1101, %v1261_v0   ;;  %264 = vperm.xlu0 %1102, %v1261_v0  }
  0x10   :  { %1103 = vset.pattern.permute.xlu1 %v1179_v7  ;;  %1105 = vset.pattern.permute.xlu0 %v1180_v8  ;;  %v1213_v7 = vmov 0  }
  0x11   :  { %274 = vperm.xlu1 %1103, %v1261_v0   ;;  %294 = vperm.xlu0 %1105, %v1261_v0  }
  0x15   :  { %1104 = vset.pattern.permute.xlu1 %v1181_v9  ;;  %1108 = vset.pattern.permute.xlu0 %v1182_v10 }
  0x16   :  { %284 = vperm.xlu1 %1104, %v1261_v0   ;;  %126 = vperm.xlu0 %1108, %v1261_v0  }
  0x1a   :  { %1106 = vset.pattern.permute.xlu1 %v1183_v11  ;;  %1111 = vset.pattern.permute.xlu0 %v1184_v12  ;;  %v1214_v12 = vmov 3  }
  0x1b   :  { %106 = vperm.xlu1 %1106, %v1261_v0   ;;  %101 = vperm.xlu0 %1111, %v1261_v0  }
  0x1f   :  { %1107 = vset.pattern.permute.xlu1 %v1185_v14  ;;  %1112 = vset.pattern.permute.xlu0 %v1186_v15 }
  0x20   :  { %116 = vperm.xlu1 %1107, %v1261_v0   ;;  %304 = vperm.xlu0 %1112, %v1278_v13  }
  0x24   :  { %1109 = vset.pattern.permute.xlu1 %v1187_v16  ;;  %1113 = vset.pattern.permute.xlu0 %v1188_v17 }
  0x25   :  { %136 = vperm.xlu1 %1109, %v1261_v0   ;;  %315 = vperm.xlu0 %1113, %v1261_v0  }
  0x29   :  { %1110 = vset.pattern.permute.xlu1 %v1189_v18  ;;  %1114 = vset.pattern.permute.xlu0 %v1190_v19 }
  0x2a   :  { %209 = vperm.xlu1 %1110, %v1261_v0   ;;  %37 = vperm.xlu0 %1114, %v1261_v0  }
  0x2e   :  { %1115 = vset.pattern.permute.xlu1 %v1191_v20  ;;  %1117 = vset.pattern.permute.xlu0 %v1192_v21 }
  0x2f   :  { %325 = vperm.xlu1 %1115, %v1261_v0   ;;  %146 = vperm.xlu0 %1117, %v1278_v13  }
  0x33   :  { %1116 = vset.pattern.permute.xlu1 %v1192_v21  ;;  %1120 = vset.pattern.permute.xlu0 %v1193_v22  ;;  %v1215_v22 = vmov 26  }
  0x34   :  { %47 = vperm.xlu1 %1116, %v1261_v0   ;;  %157 = vperm.xlu0 %1120, %v1261_v0  }
  0x38   :  { %1118 = vset.pattern.permute.xlu1 %v1194_v23  ;;  %1123 = vset.pattern.permute.xlu0 %v1195_v24 }
  0x39   :  { %335 = vperm.xlu1 %1118, %v1261_v0   ;;  %365 = vperm.xlu0 %1123, %v1261_v0  }
  0x3d   :  { %1119 = vset.pattern.permute.xlu1 %v1196_v25  ;;  %1125 = vset.pattern.permute.xlu0 %v1197_v26  ;;  %v1216_v26 = vmov 11  }
  0x3e   :  { %345 = vperm.xlu1 %1119, %v1261_v0   ;;  %375 = vperm.xlu0 %1125, %v1261_v0  }
  0x42   :  { %1121 = vset.pattern.permute.xlu1 %v1198_v27  ;;  %1127 = vset.pattern.permute.xlu0 %v1199_v28 }
  0x43   :  { %355 = vperm.xlu1 %1121, %v1261_v0  }
  0x47   :  { %1122 = vset.pattern.permute.xlu1 %v1200_v29 }
  0x48   :  { %167 = vperm.xlu1 %1122, %v1261_v0  }
  0x4c   :  { %1124 = vset.pattern.permute.xlu1 %v1201_v30  ;;  %v1217_v30 = vmov 5  }
  0x4d   :  { %177 = vperm.xlu1 %1124, %v1261_v0  }
  0x51   :  { %1126 = vset.pattern.permute.xlu1 %v1202_v31 }
  0x52   :  { %187 = vperm.xlu1 %1126, %v1261_v0  }
  0x56   :  { %1128 = vset.pattern.permute.xlu1 %v1203_v32 }
  0x81   :  { %v215_v34 = vpop.permute.xlu0 %214  ;;  %v235_v35 = vpop.permute.xlu1 %234 }
  0x82   :  { %v217_v36 = vmul.f32 %v215_v34, %v1303_v33  ;;  %v237_v37 = vmul.f32 %v235_v35, %v1303_v33  ;;  %v706_v43 = vmul.f32 %v1312_v41, %v215_v34  ;;  %v718_v49 = vmul.f32 %v1312_v41, %v235_v35 }
  0x84   :  { %219 = vrot.lane.b32.xlu0 %v217_v36, %s1204_s25 }
  0x86   :  { %v225_v38 = vpop.permute.xlu0 %224  ;;  %v245_v39 = vpop.permute.xlu1 %244 }
  0x87   :  { %v227_v40 = vmul.f32 %v225_v38, %v1303_v33  ;;  %v247_v42 = vmul.f32 %v245_v39, %v1303_v33  ;;  %v712_v46 = vmul.f32 %v1312_v41, %v225_v38  ;;  %v724_v55 = vmul.f32 %v1312_v41, %v245_v39 }
  0x88   :  { %239 = vrot.lane.b32.xlu0 %v237_v37, %s1205_s28 }
  0x89   :  { %229 = vrot.lane.b32.xlu1 %v227_v40, %s1206_s29 }
  0x8b   :  { %v255_v44 = vpop.permute.xlu1 %254  ;;  %v265_v48 = vpop.permute.xlu0 %264 }
  0x8c   :  { %249 = vrot.lane.b32.xlu0 %v247_v42, %s1207_s30  ;;  %v257_v45 = vmul.f32 %v255_v44, %v1303_v33  ;;  %v267_v51 = vmul.f32 %v265_v48, %v1303_v33  ;;  %v730_v62 = vmul.f32 %v1312_v41, %v255_v44  ;;  %v736_v2 = vmul.f32 %v1312_v41, %v265_v48 }
  0x8d   :  { %708 = vrot.lane.b32.xlu1 %v706_v43, %s1204_s25 }
  0x90   :  { %259 = vrot.lane.b32.xlu0 %v257_v45, %s1208_s0  ;;  %v275_v47 = vpop.permute.xlu1 %274  ;;  %v295_v53 = vpop.permute.xlu0 %294 }
  0x91   :  { %714 = vrot.lane.b32.xlu1 %v712_v46, %s1206_s29  ;;  %v754_v57 = vmul.f32 %v1312_v41, %v295_v53  ;;  %v277_v58 = vmul.f32 %v275_v47, %v1303_v33  ;;  %v297_v3 = vmul.f32 %v295_v53, %v1303_v33  ;;  %v742_v6 = vmul.f32 %v1312_v41, %v275_v47 }
  0x95   :  { %v285_v50 = vpop.permute.xlu1 %284  ;;  %720 = vrot.lane.b32.xlu1 %v718_v49, %s1205_s28  ;;  %v127_v59 = vpop.permute.xlu0 %126 }
  0x96   :  { %v287_v52 = vmul.f32 %v285_v50, %v1303_v33  ;;  %v748_v54 = vmul.f32 %v1312_v41, %v285_v50  ;;  %v129_v60 = vmul.f32 %v127_v59, %v1303_v33  ;;  %v660_v17 = vmul.f32 %v1312_v41, %v127_v59 }
  0x98   :  { %289 = vrot.lane.b32.xlu0 %v287_v52, %s1209_s7 }
  0x99   :  { %269 = vrot.lane.b32.xlu1 %v267_v51, %s1210_s8 }
  0x9a   :  { %v107_v56 = vpop.permute.xlu1 %106  ;;  %v1370_v20 = vpop.permute.xlu0 %101 }
  0x9b   :  { %v109_v8 = vmul.f32 %v107_v56, %v1303_v33  ;;  %v648_v14 = vmul.f32 %v1312_v41, %v107_v56 }
  0x9c   :  { %750 = vrot.lane.b32.xlu0 %v748_v54, %s1209_s7 }
  0x9d   :  { %726 = vrot.lane.b32.xlu1 %v724_v55, %s1207_s30 }
  0x9f   :  { %v117_v61 = vpop.permute.xlu1 %116  ;;  %v1374_v21 = vpop.permute.xlu0 %304 }
  0xa0   :  { %756 = vrot.lane.b32.xlu0 %v754_v57, %s1211_s9  ;;  %v654_v63 = vmul.f32 %v1312_v41, %v117_v61  ;;  %v119_v11 = vmul.f32 %v117_v61, %v1303_v33 }
  0xa1   :  { %279 = vrot.lane.b32.xlu1 %v277_v58, %s1212_s10 }
  0xa4   :  { %131 = vrot.lane.b32.xlu0 %v129_v60, %s1205_s28  ;;  %v137_v1 = vpop.permute.xlu1 %136  ;;  %v1377_v23 = vpop.permute.xlu0 %315 }
  0xa5   :  { %732 = vrot.lane.b32.xlu1 %v730_v62, %s1208_s0  ;;  %v139_v16 = vmul.f32 %v137_v1, %v1303_v33  ;;  %v666_v18 = vmul.f32 %v1312_v41, %v137_v1  ;;  %v104_v62 = vmul.f32 %v1370_v20, %v1303_v33 }
  0xa8   :  { %656 = vrot.lane.b32.xlu0 %v654_v63, %s1206_s29 }
  0xa9   :  { %738 = vrot.lane.b32.xlu1 %v736_v2, %s1210_s8  ;;  %v1347_v4 = vpop.permute.xlu1 %209  ;;  %v38_v25 = vpop.permute.xlu0 %37 }
  0xaa   :  { %v40_v27 = vmul.f32 %v38_v25, %v1303_v33  ;;  %v614_v31 = vmul.f32 %v1312_v41, %v38_v25 }
  0xac   :  { %385 = vperm.xlu0 %1127, %v1261_v0  }
  0xad   :  { %299 = vrot.lane.b32.xlu1 %v297_v3, %s1211_s9 }
  0xae   :  { %v1351_v5 = vpop.permute.xlu1 %325 }
  0xb0   :  { %1130 = vset.pattern.permute.xlu0 %v1213_v7 }
  0xb1   :  { %744 = vrot.lane.b32.xlu1 %v742_v6, %s1212_s10  ;;  %32 = vperm.xlu0 %1130, %v1261_v0  }
  0xb3   :  { %v48_v9 = vpop.permute.xlu1 %47 }
  0xb4   :  { %v50_v10 = vmul.f32 %v48_v9, %v1303_v33  ;;  %v620_v34 = vmul.f32 %v1312_v41, %v48_v9 }
  0xb5   :  { %111 = vrot.lane.b32.xlu1 %v109_v8, %s1204_s25  ;;  %1137 = vset.pattern.permute.xlu0 %v1214_v12  ;;  %v705_v8 = vmul.f32 %v1312_v41, %v1347_v4 }
  0xb6   :  { %52 = vrot.lane.b32.xlu0 %v50_v10, %s1206_s29 }
  0xb8   :  { %v1381_v24 = vpop.permute.xlu1 %335 }
  0xb9   :  { %121 = vrot.lane.b32.xlu1 %v119_v11, %s1206_s29 }
  0xbd   :  { %650 = vrot.lane.b32.xlu1 %v648_v14, %s1204_s25  ;;  %v1385_v28 = vpop.permute.xlu1 %345  ;;  %v647_v14 = vmul.f32 %v1312_v41, %v1370_v20 }
  0xc1   :  { %141 = vrot.lane.b32.xlu1 %v139_v16, %s1207_s30 }
  0xc2   :  { %v1389_v29 = vpop.permute.xlu1 %355 }
  0xc5   :  { %662 = vrot.lane.b32.xlu1 %v660_v17, %s1205_s28 }
  0xc7   :  { %v1394_v32 = vpop.permute.xlu1 %167 }
  0xc9   :  { %668 = vrot.lane.b32.xlu1 %v666_v18, %s1207_s30 }
  0xcc   :  { %v1398_v35 = vpop.permute.xlu1 %177 }
  0xcd   :  { %395 = vperm.xlu1 %1128, %v1261_v0  }
  0xd1   :  { %1129 = vset.pattern.permute.xlu1 %v1215_v22  ;;  %v1403_v36 = vpop.permute.xlu1 %187 }
  0xd2   :  { %310 = vperm.xlu1 %1129, %v1261_v0  }
  0xd6   :  { %1131 = vset.pattern.permute.xlu1 %v1213_v7 }
  0xd7   :  { %58 = vperm.xlu1 %1131, %v1278_v13  }
  0xdb   :  { %1132 = vset.pattern.permute.xlu1 %v1216_v26 }
  0xdc   :  { %152 = vperm.xlu1 %1132, %v1261_v0  }
  0xe0   :  { %42 = vrot.lane.b32.xlu1 %v40_v27, %s1204_s25 }
  0xe1   :  { %1133 = vset.pattern.permute.xlu1 %v1186_v15  ;;  %v1401_v15 = vpop.permute.xlu0 %146 }
  0xe4   :  { %69 = vperm.xlu1 %1133, %v1261_v0  }
  0xe5   :  { %v1406_v37 = vpop.permute.xlu0 %157 }
  0xe8   :  { %1134 = vset.pattern.permute.xlu1 %v1217_v30 }
  0xe9   :  { %79 = vperm.xlu1 %1134, %v1261_v0   ;;  %v1410_v39 = vpop.permute.xlu0 %365 }
  0xed   :  { %616 = vrot.lane.b32.xlu1 %v614_v31, %s1204_s25  ;;  %v1412_v43 = vpop.permute.xlu0 %375 }
  0xee   :  { %1135 = vset.pattern.permute.xlu1 %v1214_v12 }
  0xf1   :  { %622 = vrot.lane.b32.xlu1 %v620_v34, %s1206_s29 }
  0xf5   :  { %197 = vperm.xlu1 %1135, %v1278_v13  }
  0xf6   :  { %v220_v45 = vpop.permute.xlu0 %219 }
  0xf9   :  { %1136 = vset.pattern.permute.xlu1 %v1217_v30 }
  0xfa   :  { %405 = vperm.xlu1 %1136, %v1278_v13   ;;  %v240_v48 = vpop.permute.xlu0 %239 }
  0xfb   :  { %v230_v38 = vpop.permute.xlu1 %229 }
  0xfe   :  { %1138 = vset.pattern.permute.xlu1 %v1190_v19  ;;  %v250_v50 = vpop.permute.xlu0 %249  ;;  %v212_v19 = vmul.f32 %v1347_v4, %v1303_v33 }
  0xff   :  { %v709_v40 = vpop.permute.xlu1 %708 }
 0x100   :  { %v222_v56 = vadd.f32 %v220_v45, %v212_v19  ;;  %v711_v11 = vadd.f32 %v709_v40, %v705_v8 }
 0x102   :  { %v260_v53 = vpop.permute.xlu0 %259  ;;  %v232_v58 = vadd.f32 %v230_v38, %v222_v56 }
 0x103   :  { %v715_v42 = vpop.permute.xlu1 %714 }
 0x104   :  { %v242_v61 = vadd.f32 %v240_v48, %v232_v58  ;;  %v717_v18 = vadd.f32 %v715_v42, %v711_v11 }
 0x106   :  { %v252_v2 = vadd.f32 %v250_v50, %v242_v61 }
 0x107   :  { %v721_v44 = vpop.permute.xlu1 %720 }
 0x108   :  { %v262_v10 = vadd.f32 %v260_v53, %v252_v2  ;;  %v723_v30 = vadd.f32 %v721_v44, %v717_v18 }
 0x10a   :  { %v290_v55 = vpop.permute.xlu0 %289 }
 0x10b   :  { %v270_v46 = vpop.permute.xlu1 %269 }
 0x10c   :  { %v272_v16 = vadd.f32 %v270_v46, %v262_v10 }
 0x10e   :  { %v751_v59 = vpop.permute.xlu0 %750 }
 0x10f   :  { %v727_v47 = vpop.permute.xlu1 %726 }
 0x110   :  { %v729_v34 = vadd.f32 %v727_v47, %v723_v30 }
 0x112   :  { %v757_v63 = vpop.permute.xlu0 %756 }
 0x113   :  { %v280_v49 = vpop.permute.xlu1 %279 }
 0x114   :  { %v282_v25 = vadd.f32 %v280_v49, %v272_v16 }
 0x116   :  { %v132_v12 = vpop.permute.xlu0 %131  ;;  %v292_v45 = vadd.f32 %v290_v55, %v282_v25 }
 0x117   :  { %v733_v51 = vpop.permute.xlu1 %732 }
 0x118   :  { %v735_v50 = vadd.f32 %v733_v51, %v729_v34 }
 0x11a   :  { %v657_v38 = vpop.permute.xlu0 %656 }
 0x11b   :  { %v739_v52 = vpop.permute.xlu1 %738 }
 0x11c   :  { %v741_v49 = vadd.f32 %v739_v52, %v735_v50 }
 0x11f   :  { %v300_v54 = vpop.permute.xlu1 %299 }
 0x120   :  { %v302_v53 = vadd.f32 %v300_v54, %v292_v45 }
 0x122   :  { %v307_v44 = vadd.f32 %v1374_v21, %v302_v53 }
 0x123   :  { %v745_v57 = vpop.permute.xlu1 %744 }
 0x124   :  { %v747_v47 = vadd.f32 %v745_v57, %v741_v49  ;;  %v1431_v58 = vmax.f32 %v307_v44, 0.0 }
 0x126   :  { %v378_v2 = vmul.f32 %v1412_v43, %v1431_v58  ;;  %v348_v16 = vmul.f32 %v1385_v28, %v1431_v58  ;;  %v358_v45 = vmul.f32 %v1389_v29, %v1431_v58 }
 0x127   :  { %v112_v60 = vpop.permute.xlu1 %111 }
 0x128   :  { %v114_v3 = vadd.f32 %v112_v60, %v104_v62  ;;  %v753_v60 = vadd.f32 %v751_v59, %v747_v47 }
 0x12a   :  { %v759_v62 = vadd.f32 %v757_v63, %v753_v60 }
 0x12b   :  { %v122_v1 = vpop.permute.xlu1 %121  ;;  %v386_v10 = vpop.permute.xlu0 %385 }
 0x12c   :  { %v124_v6 = vadd.f32 %v122_v1, %v114_v3  ;;  %v760_v59 = vadd.f32 %v759_v62, %v1374_v21  ;;  %v318_v3 = vmul.f32 %v1377_v23, %v1431_v58  ;;  %v388_v11 = vmul.f32 %v386_v10, %v1431_v58 }
 0x12e   :  { %v134_v17 = vadd.f32 %v132_v12, %v124_v6  ;;  %v761_v63 = vmax.f32 %v760_v59, 0.0 }
 0x12f   :  { %v651_v9 = vpop.permute.xlu1 %650 }
 0x130   :  { %v653_v26 = vadd.f32 %v651_v9, %v647_v14  ;;  %v787_v8 = vmul.f32 %v761_v63, %v1389_v29  ;;  %v328_v9 = vmul.f32 %v1351_v5, %v1431_v58  ;;  %v763_v14 = vmul.f32 %v761_v63, %v1377_v23  ;;  %v33_v18 = vpop.permute.xlu0 %32 }
 0x131   :  { %v35_v25 = vmul.f32 %v33_v18, %v1303_v33  ;;  %v769_v23 = vmul.f32 %v761_v63, %v1351_v5  ;;  %v613_v53 = vmul.f32 %v1312_v41, %v33_v18  ;;  %v781_v29 = vmul.f32 %v761_v63, %v1385_v28 }
 0x132   :  { %v659_v40 = vadd.f32 %v657_v38, %v653_v26  ;;  %v805_v47 = vmul.f32 %v761_v63, %v386_v10 }
 0x133   :  { %v142_v22 = vpop.permute.xlu1 %141 }
 0x134   :  { %v144_v27 = vadd.f32 %v142_v22, %v134_v17  ;;  %v793_v17 = vmul.f32 %v761_v63, %v1410_v39 }
 0x136   :  { %v149_v31 = vadd.f32 %v1401_v15, %v144_v27 }
 0x137   :  { %v663_v4 = vpop.permute.xlu1 %662 }
 0x138   :  { %v150_v48 = vmax.f32 %v149_v31, 0.0  ;;  %v665_v19 = vadd.f32 %v663_v4, %v659_v40 }
 0x13a   :  { %v170_v20 = vmul.f32 %v1394_v32, %v150_v48  ;;  %v160_v42 = vmul.f32 %v1406_v37, %v150_v48  ;;  %v180_v51 = vmul.f32 %v1398_v35, %v150_v48  ;;  %v190_v57 = vmul.f32 %v1403_v36, %v150_v48 }
 0x13b   :  { %v669_v46 = vpop.permute.xlu1 %668 }
 0x13c   :  { %v671_v56 = vadd.f32 %v669_v46, %v665_v19  ;;  %172 = vrot.lane.b32.xlu0 %v170_v20, %s1206_s29  ;;  %162 = vrot.lane.b32.xlu1 %v160_v42, %s1204_s25 }
 0x13e   :  { %v672_v55 = vadd.f32 %v671_v56, %v1401_v15  ;;  %v338_v15 = vmul.f32 %v1381_v24, %v1431_v58  ;;  %v799_v56 = vmul.f32 %v761_v63, %v1412_v43 }
 0x140   :  { %v673_v54 = vmax.f32 %v672_v55, 0.0  ;;  %182 = vrot.lane.b32.xlu0 %v180_v51, %s1205_s28 }
 0x142   :  { %v687_v52 = vmul.f32 %v673_v54, %v1398_v35  ;;  %v675_v61 = vmul.f32 %v673_v54, %v1406_v37  ;;  %v368_v35 = vmul.f32 %v1410_v39, %v1431_v58  ;;  %v681_v37 = vmul.f32 %v673_v54, %v1394_v32  ;;  %v53_v39 = vpop.permute.xlu0 %52 }
 0x143   :  { %v693_v30 = vmul.f32 %v673_v54, %v1403_v36  ;;  %v775_v36 = vmul.f32 %v761_v63, %v1381_v24 }
 0x144   :  { %689 = vrot.lane.b32.xlu1 %v687_v52, %s1205_s28  ;;  %677 = vrot.lane.b32.xlu0 %v675_v61, %s1204_s25 }
 0x148   :  { %340 = vrot.lane.b32.xlu1 %v338_v15, %s1205_s28  ;;  %192 = vrot.lane.b32.xlu0 %v190_v57, %s1207_s30 }
 0x14c   :  { %v396_v1 = vpop.permute.xlu1 %395  ;;  %370 = vrot.lane.b32.xlu1 %v368_v35, %s1210_s8  ;;  %683 = vrot.lane.b32.xlu0 %v681_v37, %s1206_s29 }
 0x14d   :  { %v811_v38 = vmul.f32 %v761_v63, %v396_v1  ;;  %v398_v24 = vmul.f32 %v396_v1, %v1431_v58 }
 0x150   :  { %380 = vrot.lane.b32.xlu1 %v378_v2, %s1212_s10  ;;  %320 = vrot.lane.b32.xlu0 %v318_v3, %s1204_s25 }
 0x151   :  { %v311_v21 = vpop.permute.xlu1 %310 }
 0x152   :  { %v1455_v6 = vmul.f32 %v311_v21, %v1431_v58  ;;  %v1457_v32 = vmul.f32 %v761_v63, %v311_v21 }
 0x154   :  { %789 = vrot.lane.b32.xlu1 %v787_v8, %s1208_s0  ;;  %330 = vrot.lane.b32.xlu0 %v328_v9, %s1206_s29 }
 0x156   :  { %v59_v12 = vpop.permute.xlu1 %58 }
 0x158   :  { %765 = vrot.lane.b32.xlu0 %v763_v14, %s1204_s25  ;;  %390 = vrot.lane.b32.xlu1 %v388_v11, %s1209_s7 }
 0x15b   :  { %v153_v22 = vpop.permute.xlu1 %152 }
 0x15c   :  { %v155_v26 = vmul.f32 %v153_v22, %v150_v48  ;;  %v1472_v27 = vmul.f32 %v673_v54, %v153_v22  ;;  %350 = vrot.lane.b32.xlu0 %v348_v16, %s1207_s30  ;;  %795 = vrot.lane.b32.xlu1 %v793_v17, %s1210_s8 }
 0x15f   :  { %v43_v31 = vpop.permute.xlu1 %42 }
 0x160   :  { %v45_v34 = vadd.f32 %v43_v31, %v35_v25  ;;  %771 = vrot.lane.b32.xlu0 %v769_v23, %s1206_s29  ;;  %695 = vrot.lane.b32.xlu1 %v693_v30, %s1207_s30 }
 0x162   :  { %v55_v4 = vadd.f32 %v53_v39, %v45_v34 }
 0x163   :  { %v70_v48 = vpop.permute.xlu1 %69 }
 0x164   :  { %v61_v40 = vadd.f32 %v59_v12, %v55_v4  ;;  %360 = vrot.lane.b32.xlu0 %v358_v45, %s1208_s0  ;;  %813 = vrot.lane.b32.xlu1 %v811_v38, %s1211_s9 }
 0x166   :  { %v1484_v5 = vmax.f32 %v61_v40, 0.0 }
 0x168   :  { %v80_v50 = vpop.permute.xlu1 %79  ;;  %777 = vrot.lane.b32.xlu0 %v775_v36, %s1205_s28  ;;  %89 = vperm.xlu1 %1138, %v1278_v13   ;;  %v72_v19 = vmul.f32 %v70_v48, %v1484_v5 }
 0x169   :  { %v82_v51 = vmul.f32 %v80_v50, %v1484_v5 }
 0x16c   :  { %v617_v20 = vpop.permute.xlu1 %616  ;;  %783 = vrot.lane.b32.xlu0 %v781_v29, %s1207_s30  ;;  %74 = vrot.lane.b32.xlu1 %v72_v19, %s1204_s25 }
 0x16d   :  { %v619_v42 = vadd.f32 %v617_v20, %v613_v53  ;;  %1140 = vset.pattern.permute.xlu1 %v1213_v7 }
 0x170   :  { %v623_v46 = vpop.permute.xlu1 %622  ;;  %400 = vrot.lane.b32.xlu0 %v398_v24, %s1211_s9 }
 0x171   :  { %v625_v49 = vadd.f32 %v623_v46, %v619_v42 }
 0x173   :  { %v626_v44 = vadd.f32 %v625_v49, %v59_v12 }
 0x174   :  { %801 = vrot.lane.b32.xlu0 %v799_v56, %s1212_s10  ;;  %v198_v54 = vpop.permute.xlu1 %197 }
 0x175   :  { %v1499_v28 = vmax.f32 %v626_v44, 0.0 }
 0x177   :  { %v629_v55 = vmul.f32 %v1499_v28, %v70_v48  ;;  %v635_v43 = vmul.f32 %v1499_v28, %v80_v50 }
 0x178   :  { %807 = vrot.lane.b32.xlu0 %v805_v47, %s1209_s7 }
 0x179   :  { %631 = vrot.lane.b32.xlu1 %v629_v55, %s1204_s25  ;;  %v1510_v58 = vpop.permute.xlu1 %405 }
 0x17c   :  { %64 = vperm.xlu0 %1137, %v1261_v0  }
 0x180   :  { %84 = vrot.lane.b32.xlu0 %v82_v51, %s1206_s29 }
 0x181   :  { %1139 = vset.pattern.permute.xlu0 %v1213_v7 }
 0x184   :  { %637 = vrot.lane.b32.xlu0 %v635_v43, %s1206_s29 }
 0x1ae   :  { %v163_v60 = vpop.permute.xlu1 %162  ;;  %v173_v52 = vpop.permute.xlu0 %172 }
 0x1af   :  { %v165_v61 = vadd.f32 %v163_v60, %v155_v26 }
 0x1b1   :  { %v175_v15 = vadd.f32 %v173_v52, %v165_v61 }
 0x1b2   :  { %v183_v62 = vpop.permute.xlu0 %182 }
 0x1b3   :  { %v185_v59 = vadd.f32 %v183_v62, %v175_v15 }
 0x1b6   :  { %v690_v57 = vpop.permute.xlu1 %689  ;;  %v678_v0 = vpop.permute.xlu0 %677 }
 0x1b7   :  { %v680_v34 = vadd.f32 %v678_v0, %v1472_v27 }
 0x1ba   :  { %v341_v35 = vpop.permute.xlu1 %340  ;;  %v193_v37 = vpop.permute.xlu0 %192 }
 0x1bb   :  { %v195_v1 = vadd.f32 %v193_v37, %v185_v59 }
 0x1bd   :  { %v200_v63 = vadd.f32 %v198_v54, %v195_v1 }
 0x1be   :  { %v684_v7 = vpop.permute.xlu0 %683  ;;  %v371_v3 = vpop.permute.xlu1 %370 }
 0x1bf   :  { %v201_v2 = vmax.f32 %v200_v63, 0.0  ;;  %v686_v45 = vadd.f32 %v684_v7, %v680_v34 }
 0x1c1   :  { %v203_v21 = vsel %vm202_vm0, %v201_v2, 0.0  ;;  %v692_v53 = vadd.f32 %v690_v57, %v686_v45 }
 0x1c2   :  { %204 = vadd.xlane.f32.xlu1 %v203_v21  ;;  %v321_v8 = vpop.permute.xlu0 %320  ;;  %v381_v9 = vpop.permute.xlu1 %380 }
 0x1c3   :  { %v323_v14 = vadd.f32 %v321_v8, %v1455_v6 }
 0x1c6   :  { %v331_v10 = vpop.permute.xlu0 %330  ;;  %v790_v12 = vpop.permute.xlu1 %789 }
 0x1c7   :  { %v333_v17 = vadd.f32 %v331_v10, %v323_v14 }
 0x1c9   :  { %v343_v25 = vadd.f32 %v341_v35, %v333_v17 }
 0x1ca   :  { %v766_v11 = vpop.permute.xlu0 %765  ;;  %v391_v18 = vpop.permute.xlu1 %390 }
 0x1cb   :  { %v768_v39 = vadd.f32 %v766_v11, %v1457_v32 }
 0x1ce   :  { %v351_v16 = vpop.permute.xlu0 %350  ;;  %v796_v31 = vpop.permute.xlu1 %795 }
 0x1cf   :  { %v353_v26 = vadd.f32 %v351_v16, %v343_v25 }
 0x1d2   :  { %v772_v22 = vpop.permute.xlu0 %771  ;;  %v696_v6 = vpop.permute.xlu1 %695 }
 0x1d3   :  { %v774_v48 = vadd.f32 %v772_v22, %v768_v39  ;;  %v698_v29 = vadd.f32 %v696_v6, %v692_v53  ;;  %v1218_v22 = vmov 0.0  }
 0x1d4   :  { %1027 = vmatprep.subr.mxu0 %v1218_v22  ;;  %1032 = vmatprep.subr.mxu1 %v1218_v22 }
 0x1d5   :  { %v699_v49 = vadd.f32 %v698_v29, %v198_v54  ;;  %1029 = vmatprep.mubr.msk.f32.mxu0 %vm1219_vm3, %v1218_v22  ;;  %1034 = vmatprep.mubr.msk.f32.mxu1 %vm1219_vm3, %v1218_v22 }
 0x1d6   :  { %v361_v23 = vpop.permute.xlu0 %360  ;;  %v814_v52 = vpop.permute.xlu1 %813 }
 0x1d7   :  { %v363_v30 = vadd.f32 %v361_v23, %v353_v26  ;;  %v700_v51 = vmax.f32 %v699_v49, 0.0 }
 0x1d9   :  { %v373_v38 = vadd.f32 %v371_v3, %v363_v30  ;;  %v701_v62 = vsel %vm202_vm0, %v700_v51, 0.0 }
 0x1da   :  { %v778_v4 = vpop.permute.xlu0 %777 }
 0x1db   :  { %v780_v40 = vadd.f32 %v778_v4, %v774_v48  ;;  %v383_v36 = vadd.f32 %v381_v9, %v373_v38 }
 0x1dd   :  { %v393_v20 = vadd.f32 %v391_v18, %v383_v36 }
 0x1de   :  { %v784_v50 = vpop.permute.xlu0 %783 }
 0x1df   :  { %v786_v19 = vadd.f32 %v784_v50, %v780_v40 }
 0x1e1   :  { %v792_v24 = vadd.f32 %v790_v12, %v786_v19 }
 0x1e2   :  { %v401_v42 = vpop.permute.xlu0 %400 }
 0x1e3   :  { %v403_v46 = vadd.f32 %v401_v42, %v393_v20  ;;  %v798_v32 = vadd.f32 %v796_v31, %v792_v24  ;;  %v26_v24 = vld [vmem:[%s1560_s3] sm:$0xf] }
 0x1e5   :  { %v408_v27 = vadd.f32 %v1510_v58, %v403_v46 }
 0x1e6   :  { %v802_v56 = vpop.permute.xlu0 %801 }
 0x1e7   :  { %v409_v44 = vmax.f32 %v408_v27, 0.0  ;;  %v804_v47 = vadd.f32 %v802_v56, %v798_v32  ;;  %v90_v0 = vpop.permute.xlu1 %89 }
 0x1e9   :  { %v411_v55 = vsel %vm410_vm1, %v409_v44, 0.0 }
 0x1ea   :  { %412 = vadd.xlane.f32.xlu0 %v411_v55  ;;  %v808_v43 = vpop.permute.xlu0 %807 }
 0x1eb   :  { %v810_v60 = vadd.f32 %v808_v43, %v804_v47  ;;  %v75_v59 = vpop.permute.xlu1 %74 }
 0x1ed   :  { %v816_v61 = vadd.f32 %v814_v52, %v810_v60  ;;  %v27_v60 = vld [vmem:[%s1561_s4] sm:$0xff]  ;;  %s1220_s4 = smov [#allocation2]  }
 0x1ee   :  { %702 = vadd.xlane.f32.xlu0 %v701_v62  ;;  %s1000_s15 = sshll.u32 %s1220_s4, 4  ;;  %s1001_s15 = int_to_ptr.vmem [resolvable:$true] %s1000_s15 }
 0x1ef   :  { %v817_v15 = vadd.f32 %v816_v61, %v1510_v58  ;;  %v632_v3 = vpop.permute.xlu1 %631  ;;  %s1149_s16 = scalar_lea.vmem %s1001_s15, 256  ;;  %p1154_p1 = scmp.lt.s32.totalorder %s1001_s15, %s1001_s15 }
 0x1f0   :  { %p1150_p0 = scmp.ne.s32.totalorder %s1001_s15, %s1149_s16  ;;  %p1155_p2 = scmp.lt.s32.totalorder %s1149_s16, %s1149_s16 }
 0x1f1   :  { %v818_v54 = vmax.f32 %v817_v15, 0.0 }
 0x1f2   :  { %p1156_p3 = por %p1155_p2, %p1154_p1 }
 0x1f3   :  { %v819_v57 = vsel %vm410_vm1, %v818_v54, 0.0 }
 0x1f4   :  { %820 = vadd.xlane.f32.xlu1 %v819_v57  ;;  %p1157_p4 = pnand %p1156_p3, %p1150_p0 }
 0x1fb   :  { %v65_v35 = vpop.permute.xlu0 %64 }
 0x1fc   :  { %v67_v37 = vmul.f32 %v65_v35, %v1484_v5  ;;  %v628_v1 = vmul.f32 %v1499_v28, %v65_v35  ;;  %v1011_v5 = vld [vmem:[%s1562_s5] ss:$0 sm:$0xff] }
 0x1fe   :  { %v77_v63 = vadd.f32 %v75_v59, %v67_v37  ;;  %v634_v8 = vadd.f32 %v632_v3, %v628_v1 }
 0x1ff   :  { %v85_v7 = vpop.permute.xlu0 %84 }
 0x200   :  { %v87_v2 = vadd.f32 %v85_v7, %v77_v63 }
 0x202   :  { %v92_v21 = vadd.f32 %v90_v0, %v87_v2 }
 0x203   :  { %v638_v9 = vpop.permute.xlu0 %637 }
 0x204   :  { %v640_v10 = vadd.f32 %v638_v9, %v634_v8  ;;  %v93_v58 = vmax.f32 %v92_v21, 0.0 }
 0x206   :  { %v641_v11 = vadd.f32 %v640_v10, %v90_v0  ;;  %v95_v12 = vsel %vm94_vm2, %v93_v58, 0.0 }
 0x207   :  { %96 = vadd.xlane.f32.xlu0 %v95_v12 }
 0x208   :  { %v642_v14 = vmax.f32 %v641_v11, 0.0 }
 0x20a   :  { %v643_v16 = vsel %vm94_vm2, %v642_v14, 0.0 }
 0x20b   :  { %644 = vadd.xlane.f32.xlu1 %v643_v16 }
 0x21c   :  { %435 = vrot.lane.b32.xlu1 %v1011_v5, %s1205_s28 }
 0x24f   :  { %v205_v28 = vpop.xlane.xlu1 %204 }
 0x250   :  { %v207_v17 = vmul.f32 0.041666668, %v205_v28 }
 0x252   :  { %v423_v18 = vmul.f32 %v1011_v5, %v207_v17 }
 0x254   :  { %425 = vrot.lane.b32.xlu0 %v423_v18, %s1204_s25 }
 0x277   :  { %v413_v25 = vpop.xlane.xlu0 %412 }
 0x278   :  { %v415_v26 = vmul.f32 0.071428575, %v413_v25 }
 0x27a   :  { %v429_v23 = vmul.f32 %v1011_v5, %v415_v26 }
 0x27b   :  { %v703_v30 = vpop.xlane.xlu0 %702 }
 0x27c   :  { %v704_v31 = vmul.f32 0.041666668, %v703_v30  ;;  %431 = vrot.lane.b32.xlu1 %v429_v23, %s1206_s29 }
 0x27e   :  { %v824_v34 = vmul.f32 %v1011_v5, %v704_v31 }
 0x280   :  { %826 = vrot.lane.b32.xlu0 %v824_v34, %s1204_s25 }
 0x281   :  { %v821_v39 = vpop.xlane.xlu1 %820 }
 0x282   :  { %v822_v38 = vmul.f32 0.071428575, %v821_v39 }
 0x284   :  { %v830_v4 = vmul.f32 %v1011_v5, %v822_v38  ;;  %439 = vrot.lane.b32.xlu0 %v1278_v13, %s1210_s8 }
 0x286   :  { %832 = vrot.lane.b32.xlu1 %v830_v4, %s1206_s29 }
 0x28a   :  { %517 = vrot.lane.b32.xlu1 %v1278_v13, %s1212_s10 }
 0x294   :  { %v97_v45 = vpop.xlane.xlu0 %96 }
 0x295   :  { %v99_v40 = vmul.f32 0.035714287, %v97_v45 }
 0x297   :  { %v422_v50 = vmul.f32 %v1011_v5, %v99_v40 }
 0x298   :  { %v645_v48 = vpop.xlane.xlu1 %644 }
 0x299   :  { %v646_v20 = vmul.f32 0.035714287, %v645_v48 }
 0x29b   :  { %v823_v13 = vmul.f32 %v1011_v5, %v646_v20 }
 0x29c   :  { %v436_v36 = vpop.permute.xlu1 %435 }
 0x2c6   :  { %v426_v6 = vpop.permute.xlu0 %425 }
 0x2c7   :  { %v428_v53 = vadd.f32 %v426_v6, %v422_v50 }
 0x2ee   :  { %v432_v19 = vpop.permute.xlu1 %431 }
 0x2ef   :  { %v434_v29 = vadd.f32 %v432_v19, %v428_v53 }
 0x2f1   :  { %v438_v42 = vadd.f32 %v436_v36, %v434_v29 }
 0x2f2   :  { %v827_v46 = vpop.permute.xlu0 %826 }
 0x2f3   :  { %1028 = vmatpush3.msra.mxu0 %v438_v42  ;;  %v829_v49 = vadd.f32 %v827_v46, %v823_v13 }
 0x2f4   :  { %1030 = vmatmul.mubr.msk.f32.vlgmr.msra.gmra.mrb[0].mxu0 %vm442_vm4, %v26_v24  ;;  %1037 = vmatprep.subr.mxu0 %v1218_v22 }
 0x2f5   :  { %1039 = vmatprep.mubr.msk.f32.mxu0 %vm1219_vm3, %v1218_v22 }
 0x2f6   :  { %v440_v44 = vpop.permute.xlu0 %439 }
 0x2f8   :  { %v833_v27 = vpop.permute.xlu1 %832 }
 0x2f9   :  { %v835_v56 = vadd.f32 %v833_v27, %v829_v49 }
 0x2fb   :  { %v836_v32 = vadd.f32 %v835_v56, %v436_v36 }
 0x2fc   :  { %v518_v54 = vpop.permute.xlu1 %517 }
 0x2fd   :  { %1038 = vmatpush3.msra.mxu0 %v836_v32 }
 0x2fe   :  { %1040 = vmatmul.mubr.msk.f32.vlgmr.msra.gmra.mrb[2].mxu0 %vm442_vm4, %v26_v24 }
 0x3c7   :  { %v512_v47 = vpop.f32.mrb[0].mxu0 }
 0x3c8   :  { %v1031_v55 = vpop.f32.mrb[1].mxu0  ;;  %v513_v51 = vadd.f32 %v512_v47, %v440_v44 }
 0x3ca   :  { %v516_v43 = vmax.f32 %v513_v51, 0.0 }
 0x3cc   :  { %1033 = vmatpush3.msk.msra.mxu1 %vm524_vm5, %v516_v43 }
 0x3cd   :  { %1035 = vmatmul.mubr.msk.f32.vlgmr.msra.gmra.mrb[0].mxu1 %vm520_vm6, %v27_v60  ;;  %1042 = vmatprep.subr.mxu1 %v1218_v22 }
 0x3ce   :  { %1044 = vmatprep.mubr.msk.f32.mxu1 %vm1219_vm3, %v1218_v22 }
 0x3d1   :  { %v903_v52 = vpop.f32.mrb[2].mxu0 }
 0x3d2   :  { %v904_v61 = vadd.f32 %v903_v52, %v440_v44  ;;  %v1041_v62 = vpop.f32.mrb[3].mxu0 }
 0x3d4   :  { %v907_v15 = vmax.f32 %v904_v61, 0.0 }
 0x3d6   :  { %1043 = vmatpush3.msk.msra.mxu1 %vm524_vm5, %v907_v15 }
 0x3d7   :  { %1045 = vmatmul.mubr.msk.f32.vlgmr.msra.gmra.mrb[2].mxu1 %vm520_vm6, %v27_v60 }
 0x4a0   :  { %v594_v57 = vpop.f32.mrb[0].mxu1 }
 0x4a1   :  { %v595_v0 = vadd.f32 %v594_v57, %v518_v54  ;;  %v1036_v59 = vpop.f32.mrb[1].mxu1 }
 0x4a3   :  { %v598_v35 = vsub.f32 0.0, %v595_v0 }
 0x4a5   :  { %v599_v37 = vmul.f32 1.442695, %v598_v35 }
 0x4a7   :  { %1141 = vpow2.f32 %v599_v37 }
 0x4aa   :  { %v977_v1 = vpop.f32.mrb[2].mxu1 }
 0x4ab   :  { %v978_v63 = vadd.f32 %v977_v1, %v518_v54  ;;  %v1046_v7 = vpop.f32.mrb[3].mxu1 }
 0x4ad   :  { %v981_v2 = vsub.f32 0.0, %v978_v63 }
 0x4af   :  { %v982_v3 = vmul.f32 1.442695, %v981_v2 }
 0x4b1   :  { %v1142_v21 = vpop.eup %1141  ;;  %1143 = vpow2.f32 %v982_v3 }
 0x4b2   :  { %v601_v8 = vadd.f32 1.0, %v1142_v21 }
 0x4b4   :  { %1145 = vrcp.f32 %v601_v8 }
 0x4bb   :  { %v1144_v9 = vpop.eup %1143 }
 0x4bc   :  { %v984_v10 = vadd.f32 1.0, %v1144_v9 }
 0x4be   :  { %v1146_v58 = vpop.eup %1145  ;;  %1147 = vrcp.f32 %v984_v10 }
 0x4bf   :  { %606 = vperm.xlu0 %1139, %v1146_v58  }
 0x4c8   :  { %v1148_v11 = vpop.eup %1147 }
 0x4c9   :  { %989 = vperm.xlu1 %1140, %v1148_v11  }
 0x53e   :  { %v607_v12 = vpop.permute.xlu0 %606 }
 0x53f   :  { %v609_v14 = vmul.f32 %v607_v12, %v1303_v33 }
 0x541   :  { %610 = vst [vmem:[#allocation2] sm:$0xff] %v609_v14 }
 0x548   :  { %v990_v16 = vpop.permute.xlu1 %989 }
 0x549   :  { %v992_v5 = vmul.f32 %v1312_v41, %v990_v16 }
 0x54b   :  { %994 = vst [vmem:[#allocation2 + $0x8] sm:$0xff] %v992_v5 }
 0x54c   :  { %1160 = shalt.err (!%p1157_p4)
}
 0x54d   :  { %s1161_s19 = scalar_lea.hbm %s1563_s6, 256 }
 0x54e   :  { %p1162_p5 = scmp.ne.s32.totalorder %s1563_s6, %s1161_s19  ;;  %p1165_p6 = scmp.lt.u32.totalorder %s1161_s19, %s1563_s6 }
 0x550   :  { %p1167_p7 = pnand %p1165_p6, %p1162_p5 }
 0x552   :  { %1170 = shalt.err (!%p1167_p7)
}
 0x553   :  { %s1221_s23 = smov 128   ;;  %s1222_s2 = smov 8  }
 0x554   :  { %1006 = dma.vmem_to_hbm [thread:$0]  %s1001_s15, 256, %s1563_s6, [#allocation3], %s1221_s23, %s1221_s23, %s1222_s2  }
 0x555   :  { %1171 = dma.done.wait [#allocation3], 256  }
 0x556   :  { %1172 = vsyncadd [#allocation3], 4294967040 }
 0x557   :  { %1010 = vsyncpa [#allocation3], 1 }

</bundles_post_ra>
